<compile_context>
chip_gen: v7x
topology: tpu7x:2x2x1
jax: 0.10.0
libtpu: 0.0.40
codegen_flags: <defaults>
</compile_context>

<pallas_src>
import functools

import jax
import jax.numpy as jnp
from jax.experimental import pallas as pl
from jax.experimental.pallas import tpu as pltpu

BN_EPS = 1e-5
LANE = 128


def _round_up(n, m):
    return ((n + m - 1) // m) * m


def _vmem_limit_bytes():
    """Generation-aware VMEM budget: ~3/4 of physical VMEM (96 MiB on
    v5e/v6e, 48 MiB on v7x); 48 MiB fallback is safe on every generation."""
    try:
        cap = getattr(pltpu.get_tpu_info(), "vmem_capacity_bytes", None)
        if cap:
            return int(min(100 * 1024 * 1024, (cap * 3) // 4))
    except Exception:
        pass
    return 48 * 1024 * 1024


# ----------------------------------------------------------------------------
# Single fused Pallas kernel for the whole network (P4 weight streaming)
# ----------------------------------------------------------------------------

def _mlp_kernel(*refs, kinds):
    """Whole-network forward in one kernel.

    refs = (x, aux, w_hbm[0..L-1], out, w_vmem[0..L-1], dma_sems)

      x       : (B, Dp)      f32, VMEM (auto-DMA'd, lane-padded)
      aux     : (2L, maxNp)  f32, VMEM; row 2i = per-output-channel dequant
                scale for linear op i, row 2i+1 = its (BN-folded) bias.
      w_hbm   : per-op packed weights, left in HBM (memory_space=pl.ANY);
                main||skip concatenated along N for residual layers.
      w_vmem  : matching exact-size VMEM scratch buffers (DMA targets).
      dma_sems: one DMA-completion semaphore per weight.
    """
    L = len(kinds)
    x_ref, aux_ref = refs[0], refs[1]
    w_hbm = refs[2:2 + L]
    o_ref = refs[2 + L]
    w_vmem = refs[3 + L:3 + 2 * L]
    sems = refs[3 + 2 * L]

    # Kick off every weight DMA immediately: copies for layers i+1..L-1 stay
    # in flight while layer i's matmul runs (DMA/compute overlap), instead of
    # all weight bytes landing before the first matmul can issue.
    for i in range(L):
        pltpu.make_async_copy(w_hbm[i], w_vmem[i], sems.at[i]).start()

    def linear(h, i):
        # Wait only for THIS op's weights, then: widen to bf16 (exact for
        # int8 values), MXU matmul with f32 accumulation, per-output-channel
        # dequant scale + folded bias applied to the accumulator.
        pltpu.make_async_copy(w_hbm[i], w_vmem[i], sems.at[i]).wait()
        w = w_vmem[i][...]
        if w.dtype == jnp.float32:
            lhs, rhs = h, w                                   # exact f32 path
        else:
            lhs, rhs = h.astype(jnp.bfloat16), w.astype(jnp.bfloat16)
        acc = jnp.dot(lhs, rhs, preferred_element_type=jnp.float32)
        n = w.shape[1]
        scale = aux_ref[2 * i:2 * i + 1, :n]      # (1, n), broadcasts over B
        bias = aux_ref[2 * i + 1:2 * i + 2, :n]
        return acc * scale + bias

    h = x_ref[...]                                            # (B, Dp) f32
    gate_src = None
    for i, kind in enumerate(kinds):
        y = linear(h, i)
        if kind == "in_relu":
            # input layer: Linear -> BN(folded) -> ReLU -> Dropout(eval = id)
            h = jnp.maximum(y, 0.0)
        elif kind == "res_split":
            # hidden layer with Linear skip: main||skip fused into one matmul
            half = y.shape[1] // 2
            h = jnp.maximum(y[:, :half], 0.0) + y[:, half:]
        elif kind == "res_id":
            # hidden layer with Identity skip
            h = jnp.maximum(y, 0.0) + h
        elif kind == "attn_relu":
            gate_src = h                          # value the sigmoid gate multiplies
            h = jnp.maximum(y, 0.0)
        elif kind == "attn_sigmoid":
            h = gate_src * jax.nn.sigmoid(y)
        elif kind == "out":
            h = y
        else:
            raise ValueError(kind)
    o_ref[...] = h.astype(o_ref.dtype)


# ----------------------------------------------------------------------------
# Host-side packing: BN folding, 128-lane padding, main||skip fusion,
# per-channel weight quantization, merged scale/bias slab.  Runs ONCE.
# ----------------------------------------------------------------------------

def _fold_bn(w, b, bn):
    s = bn["gamma"] / jnp.sqrt(bn["var"] + BN_EPS)
    return w * s[None, :], (b - bn["mean"]) * s + bn["beta"]


def _pad_wb(w, b):
    k, n = w.shape
    kp, np_ = _round_up(k, LANE), _round_up(n, LANE)
    return (jnp.pad(w, ((0, kp - k), (0, np_ - n))),
            jnp.pad(b, (0, np_ - n)))


def _quantize(w, weight_format):
    """Per-output-channel quantization of the (BN-folded, padded) weight."""
    n = w.shape[1]
    if weight_format == "f32":
        return w.astype(jnp.float32), jnp.ones((n,), jnp.float32)
    if weight_format == "bf16":
        return w.astype(jnp.bfloat16), jnp.ones((n,), jnp.float32)
    amax = jnp.max(jnp.abs(w), axis=0)
    if weight_format == "int8":
        scale = jnp.where(amax > 0, amax / 127.0, 1.0)
        q = jnp.clip(jnp.round(w / scale[None, :]), -127, 127).astype(jnp.int8)
        return q, scale.astype(jnp.float32)
    if weight_format == "fp8":
        # v7x-friendly storage alternative (its MXU has no integer path);
        # identical bandwidth win, dequantized to bf16 in-kernel the same way.
        scale = jnp.where(amax > 0, amax / 448.0, 1.0)
        q = (w / scale[None, :]).astype(jnp.float8_e4m3fn)
        return q, scale.astype(jnp.float32)
    raise ValueError(weight_format)


def pack_params(params, weight_format="int8"):
    ops = []  # (padded f32 weight, padded bias, kind)

    w, b = _fold_bn(params["w0"], params["b0"], params["bn0"])
    ops.append((*_pad_wb(w, b), "in_relu"))

    for layer in params["hidden"]:
        w, b = _fold_bn(layer["w"], layer["b"], layer["bn"])
        wp, bp = _pad_wb(w, b)
        if layer["skip"] is not None:
            sw, sb = _pad_wb(layer["skip"]["w"], layer["skip"]["b"])
            ops.append((jnp.concatenate([wp, sw], axis=1),
                        jnp.concatenate([bp, sb], axis=0), "res_split"))
        else:
            ops.append((wp, bp, "res_id"))

    ops.append((*_pad_wb(params["attn_w1"], params["attn_b1"]), "attn_relu"))
    ops.append((*_pad_wb(params["attn_w2"], params["attn_b2"]), "attn_sigmoid"))
    ops.append((*_pad_wb(params["out_w"], params["out_b"]), "out"))

    max_n = max(int(w.shape[1]) for w, _, _ in ops)
    aux = jnp.zeros((2 * len(ops), max_n), jnp.float32)
    weights, kinds = [], []
    for i, (w, b, kind) in enumerate(ops):
        q, scale = _quantize(w, weight_format)
        weights.append(q)
        kinds.append(kind)
        n = int(w.shape[1])
        aux = aux.at[2 * i, :n].set(scale)
        aux = aux.at[2 * i + 1, :n].set(b)

    return dict(weights=tuple(weights), aux=aux, kinds=tuple(kinds),
                num_classes=int(params["out_w"].shape[1]))


def make_forward(packed):
    """Build a jitted forward(x) that closes over the pre-packed parameters,
    so BN-folding / padding / quantization never re-run per inference call."""
    weights, aux, kinds = packed["weights"], packed["aux"], packed["kinds"]
    num_classes = packed["num_classes"]
    L = len(weights)
    d_in_p = int(weights[0].shape[0])
    n_out_p = int(weights[-1].shape[1])

    kernel = functools.partial(_mlp_kernel, kinds=kinds)
    vmem_limit = _vmem_limit_bytes()

    # TODO(synk): for very large f32-weight configs, switch the per-layer
    # VMEM buffers to a rotating 2-slot max-size buffer to cap peak VMEM at
    # the two largest layers instead of the whole model.

    @jax.jit
    def forward(x):
        B, D = x.shape
        xp = jnp.pad(x.astype(jnp.float32), ((0, 0), (0, d_in_p - D)))
        in_specs = ([pl.BlockSpec((B, d_in_p), lambda i: (0, 0)),
                     pl.BlockSpec(aux.shape, lambda i: (0, 0))]
                    + [pl.BlockSpec(memory_space=pl.ANY)] * L)
        out = pl.pallas_call(
            kernel,
            out_shape=jax.ShapeDtypeStruct((B, n_out_p), jnp.float32),
            grid=(1,),
            in_specs=in_specs,
            out_specs=pl.BlockSpec((B, n_out_p), lambda i: (0, 0)),
            scratch_shapes=(
                [pltpu.VMEM(tuple(w.shape), w.dtype) for w in weights]
                + [pltpu.SemaphoreType.DMA((L,))]),
            compiler_params=pltpu.CompilerParams(
                dimension_semantics=("arbitrary",),
                vmem_limit_bytes=vmem_limit),
        )(xp, aux, *weights)
        return out[:, :num_classes]

    return forward


# ----------------------------------------------------------------------------
# Parameters (deterministic, synthetic)
# ----------------------------------------------------------------------------

def _init_linear(key, fan_in, fan_out):
    k1, k2 = jax.random.split(key)
    bound = 1.0 / jnp.sqrt(jnp.float32(fan_in))
    w = jax.random.uniform(k1, (fan_in, fan_out), jnp.float32, -bound, bound)
    b = jax.random.uniform(k2, (fan_out,), jnp.float32, -bound, bound)
    return w, b


def _init_bn(key, dim):
    # Synthetic "trained" BatchNorm1d statistics so the eval-mode affine path
    # is numerically non-trivial.
    k1, k2, k3, k4 = jax.random.split(key, 4)
    return dict(
        gamma=jax.random.uniform(k1, (dim,), jnp.float32, 0.5, 1.5),
        beta=jax.random.uniform(k2, (dim,), jnp.float32, -0.5, 0.5),
        mean=jax.random.uniform(k3, (dim,), jnp.float32, -0.1, 0.1),
        var=jax.random.uniform(k4, (dim,), jnp.float32, 0.5, 1.5),
    )


def init_params(key, input_dim, num_classes, hidden_dims):
    keys = jax.random.split(key, 8 + 4 * len(hidden_dims))
    ki = iter(keys)
    params = {}
    params["w0"], params["b0"] = _init_linear(next(ki), input_dim, hidden_dims[0])
    params["bn0"] = _init_bn(next(ki), hidden_dims[0])

    hidden = []
    for i in range(len(hidden_dims) - 1):
        d_in, d_out = hidden_dims[i], hidden_dims[i + 1]
        w, b = _init_linear(next(ki), d_in, d_out)
        bn = _init_bn(next(ki), d_out)
        if d_in != d_out:
            sw, sb = _init_linear(next(ki), d_in, d_out)
            skip = {"w": sw, "b": sb}
        else:
            skip = None  # nn.Identity
        hidden.append({"w": w, "b": b, "bn": bn, "skip": skip})
    params["hidden"] = hidden

    h_last = hidden_dims[-1]
    params["attn_w1"], params["attn_b1"] = _init_linear(next(ki), h_last, h_last // 4)
    params["attn_w2"], params["attn_b2"] = _init_linear(next(ki), h_last // 4, h_last)
    params["out_w"], params["out_b"] = _init_linear(next(ki), h_last, num_classes)
    return params


# ----------------------------------------------------------------------------
# Pure-JAX reference (PyTorch eval semantics)
# ----------------------------------------------------------------------------

def reference(params, x):
    def lin(x, w, b):
        return x @ w + b

    def bn(x, p):
        return (x - p["mean"]) / jnp.sqrt(p["var"] + BN_EPS) * p["gamma"] + p["beta"]

    x = jax.nn.relu(bn(lin(x, params["w0"], params["b0"]), params["bn0"]))
    for layer in params["hidden"]:
        identity = x
        h = jax.nn.relu(bn(lin(x, layer["w"], layer["b"]), layer["bn"]))
        if layer["skip"] is None:
            x = h + identity
        else:
            x = h + lin(identity, layer["skip"]["w"], layer["skip"]["b"])
    a = jax.nn.relu(lin(x, params["attn_w1"], params["attn_b1"]))
    a = jax.nn.sigmoid(lin(a, params["attn_w2"], params["attn_b2"]))
    x = x * a
    return lin(x, params["out_w"], params["out_b"])


# ----------------------------------------------------------------------------
# Main
# ----------------------------------------------------------------------------

if __name__ == "__main__":
    # Small shapes consistent with the module structure
    # (original: input_dim=feature_dim, hidden_dims=[2048,1024,512,256]).
    input_dim = 64
    num_classes = 10
    hidden_dims = [128, 64, 64, 32]   # includes one Identity skip (64 -> 64)
    batch = 8

    key = jax.random.PRNGKey(0)
    k_params, k_x = jax.random.split(key)
    params = init_params(k_params, input_dim, num_classes, hidden_dims)
    x = jax.random.normal(k_x, (batch, input_dim), jnp.float32)

    ref = reference(params, x)
    ref_scale = 1.0 + float(jnp.max(jnp.abs(ref)))

    # 1) f32-weight run: tight semantic check against the PyTorch-eval reference.
    fwd_f32 = make_forward(pack_params(params, weight_format="f32"))
    out_f32 = jax.block_until_ready(fwd_f32(x))
    assert out_f32.shape == (batch, num_classes), out_f32.shape
    err_f32 = float(jnp.max(jnp.abs(out_f32 - ref)))
    assert err_f32 <= 2e-3 * ref_scale, f"f32 max abs err = {err_f32}"

    # 2) int8-weight run (the performance configuration): per-output-channel
    #    dequant scales applied to the f32 accumulator; tolerance accounts for
    #    quantization + bf16 activation rounding only.
    fwd_i8 = make_forward(pack_params(params, weight_format="int8"))
    out_i8 = jax.block_until_ready(fwd_i8(x))
    assert out_i8.shape == (batch, num_classes), out_i8.shape
    err_i8 = float(jnp.max(jnp.abs(out_i8 - ref)))
    assert err_i8 <= 5e-2 * ref_scale, f"int8 max abs err = {err_i8}"

    print("KERNEL_OK")
</pallas_src>

<mosaic_0001>
module attributes {stable_mosaic.version = 11 : i64} {
  func.func @_mlp_kernel(%arg0: i32, %arg1: memref<8x128xf32, #tpu.memory_space<vmem>>, %arg2: memref<14x256xf32, #tpu.memory_space<vmem>>, %arg3: memref<128x128xf32, #tpu.memory_space<any>>, %arg4: memref<128x256xf32, #tpu.memory_space<any>>, %arg5: memref<128x128xf32, #tpu.memory_space<any>>, %arg6: memref<128x256xf32, #tpu.memory_space<any>>, %arg7: memref<128x128xf32, #tpu.memory_space<any>>, %arg8: memref<128x128xf32, #tpu.memory_space<any>>, %arg9: memref<128x128xf32, #tpu.memory_space<any>>, %arg10: memref<8x128xf32, #tpu.memory_space<vmem>>, %arg11: memref<128x128xf32, #tpu.memory_space<vmem>>, %arg12: memref<128x256xf32, #tpu.memory_space<vmem>>, %arg13: memref<128x128xf32, #tpu.memory_space<vmem>>, %arg14: memref<128x256xf32, #tpu.memory_space<vmem>>, %arg15: memref<128x128xf32, #tpu.memory_space<vmem>>, %arg16: memref<128x128xf32, #tpu.memory_space<vmem>>, %arg17: memref<128x128xf32, #tpu.memory_space<vmem>>, %arg18: memref<7x!tpu.dma_semaphore, #tpu.memory_space<semaphore_mem>>) attributes {dimension_semantics = [#tpu.dimension_semantics<arbitrary>], iteration_bounds = array<i64: 1>, scalar_prefetch = 0 : i64, scratch_operands = 8 : i64, tpu.core_type = #tpu.core_type<tc>, window_params = [{pipeline_mode = #tpu.pipeline_mode<synchronous>, transform_indices = @transform_0, window_bounds = array<i64: 8, 128>}, {pipeline_mode = #tpu.pipeline_mode<synchronous>, transform_indices = @transform_1, window_bounds = array<i64: 14, 256>}, {}, {}, {}, {}, {}, {}, {}, {pipeline_mode = #tpu.pipeline_mode<synchronous>, transform_indices = @transform_9, window_bounds = array<i64: 8, 128>}]} {
    %c0_i32 = arith.constant 0 : i32
    %0 = tpu.memref_slice %arg18[%c0_i32] : memref<7x!tpu.dma_semaphore, #tpu.memory_space<semaphore_mem>> -> memref<1x!tpu.dma_semaphore, #tpu.memory_space<semaphore_mem>>
    %1 = tpu.memref_squeeze %0 : memref<1x!tpu.dma_semaphore, #tpu.memory_space<semaphore_mem>> -> memref<!tpu.dma_semaphore, #tpu.memory_space<semaphore_mem>>
    tpu.enqueue_dma source(%arg3 : memref<128x128xf32, #tpu.memory_space<any>>) target(%arg11 : memref<128x128xf32, #tpu.memory_space<vmem>>) target_semaphore(%1 : memref<!tpu.dma_semaphore, #tpu.memory_space<semaphore_mem>>)
    %c1_i32 = arith.constant 1 : i32
    %2 = tpu.memref_slice %arg18[%c1_i32] : memref<7x!tpu.dma_semaphore, #tpu.memory_space<semaphore_mem>> -> memref<1x!tpu.dma_semaphore, #tpu.memory_space<semaphore_mem>>
    %3 = tpu.memref_squeeze %2 : memref<1x!tpu.dma_semaphore, #tpu.memory_space<semaphore_mem>> -> memref<!tpu.dma_semaphore, #tpu.memory_space<semaphore_mem>>
    tpu.enqueue_dma source(%arg4 : memref<128x256xf32, #tpu.memory_space<any>>) target(%arg12 : memref<128x256xf32, #tpu.memory_space<vmem>>) target_semaphore(%3 : memref<!tpu.dma_semaphore, #tpu.memory_space<semaphore_mem>>)
    %c2_i32 = arith.constant 2 : i32
    %4 = tpu.memref_slice %arg18[%c2_i32] : memref<7x!tpu.dma_semaphore, #tpu.memory_space<semaphore_mem>> -> memref<1x!tpu.dma_semaphore, #tpu.memory_space<semaphore_mem>>
    %5 = tpu.memref_squeeze %4 : memref<1x!tpu.dma_semaphore, #tpu.memory_space<semaphore_mem>> -> memref<!tpu.dma_semaphore, #tpu.memory_space<semaphore_mem>>
    tpu.enqueue_dma source(%arg5 : memref<128x128xf32, #tpu.memory_space<any>>) target(%arg13 : memref<128x128xf32, #tpu.memory_space<vmem>>) target_semaphore(%5 : memref<!tpu.dma_semaphore, #tpu.memory_space<semaphore_mem>>)
    %c3_i32 = arith.constant 3 : i32
    %6 = tpu.memref_slice %arg18[%c3_i32] : memref<7x!tpu.dma_semaphore, #tpu.memory_space<semaphore_mem>> -> memref<1x!tpu.dma_semaphore, #tpu.memory_space<semaphore_mem>>
    %7 = tpu.memref_squeeze %6 : memref<1x!tpu.dma_semaphore, #tpu.memory_space<semaphore_mem>> -> memref<!tpu.dma_semaphore, #tpu.memory_space<semaphore_mem>>
    tpu.enqueue_dma source(%arg6 : memref<128x256xf32, #tpu.memory_space<any>>) target(%arg14 : memref<128x256xf32, #tpu.memory_space<vmem>>) target_semaphore(%7 : memref<!tpu.dma_semaphore, #tpu.memory_space<semaphore_mem>>)
    %c4_i32 = arith.constant 4 : i32
    %8 = tpu.memref_slice %arg18[%c4_i32] : memref<7x!tpu.dma_semaphore, #tpu.memory_space<semaphore_mem>> -> memref<1x!tpu.dma_semaphore, #tpu.memory_space<semaphore_mem>>
    %9 = tpu.memref_squeeze %8 : memref<1x!tpu.dma_semaphore, #tpu.memory_space<semaphore_mem>> -> memref<!tpu.dma_semaphore, #tpu.memory_space<semaphore_mem>>
    tpu.enqueue_dma source(%arg7 : memref<128x128xf32, #tpu.memory_space<any>>) target(%arg15 : memref<128x128xf32, #tpu.memory_space<vmem>>) target_semaphore(%9 : memref<!tpu.dma_semaphore, #tpu.memory_space<semaphore_mem>>)
    %c5_i32 = arith.constant 5 : i32
    %10 = tpu.memref_slice %arg18[%c5_i32] : memref<7x!tpu.dma_semaphore, #tpu.memory_space<semaphore_mem>> -> memref<1x!tpu.dma_semaphore, #tpu.memory_space<semaphore_mem>>
    %11 = tpu.memref_squeeze %10 : memref<1x!tpu.dma_semaphore, #tpu.memory_space<semaphore_mem>> -> memref<!tpu.dma_semaphore, #tpu.memory_space<semaphore_mem>>
    tpu.enqueue_dma source(%arg8 : memref<128x128xf32, #tpu.memory_space<any>>) target(%arg16 : memref<128x128xf32, #tpu.memory_space<vmem>>) target_semaphore(%11 : memref<!tpu.dma_semaphore, #tpu.memory_space<semaphore_mem>>)
    %c6_i32 = arith.constant 6 : i32
    %12 = tpu.memref_slice %arg18[%c6_i32] : memref<7x!tpu.dma_semaphore, #tpu.memory_space<semaphore_mem>> -> memref<1x!tpu.dma_semaphore, #tpu.memory_space<semaphore_mem>>
    %13 = tpu.memref_squeeze %12 : memref<1x!tpu.dma_semaphore, #tpu.memory_space<semaphore_mem>> -> memref<!tpu.dma_semaphore, #tpu.memory_space<semaphore_mem>>
    tpu.enqueue_dma source(%arg9 : memref<128x128xf32, #tpu.memory_space<any>>) target(%arg17 : memref<128x128xf32, #tpu.memory_space<vmem>>) target_semaphore(%13 : memref<!tpu.dma_semaphore, #tpu.memory_space<semaphore_mem>>)
    %c0 = arith.constant 0 : index
    %c0_0 = arith.constant 0 : index
    %14 = vector.load %arg1[%c0, %c0_0] : memref<8x128xf32, #tpu.memory_space<vmem>>, vector<8x128xf32>
    %c0_i32_1 = arith.constant 0 : i32
    %15 = tpu.memref_slice %arg18[%c0_i32_1] : memref<7x!tpu.dma_semaphore, #tpu.memory_space<semaphore_mem>> -> memref<1x!tpu.dma_semaphore, #tpu.memory_space<semaphore_mem>>
    %16 = tpu.memref_squeeze %15 : memref<1x!tpu.dma_semaphore, #tpu.memory_space<semaphore_mem>> -> memref<!tpu.dma_semaphore, #tpu.memory_space<semaphore_mem>>
    tpu.wait_dma2 semaphore(%16 : memref<!tpu.dma_semaphore, #tpu.memory_space<semaphore_mem>>) src(%arg3 : memref<128x128xf32, #tpu.memory_space<any>>) dst(%arg11 : memref<128x128xf32, #tpu.memory_space<vmem>>)
    %c0_2 = arith.constant 0 : index
    %c0_3 = arith.constant 0 : index
    %17 = vector.load %arg11[%c0_2, %c0_3] : memref<128x128xf32, #tpu.memory_space<vmem>>, vector<128x128xf32>
    %cst = arith.constant dense<0.000000e+00> : vector<8x128xf32>
    %18 = tpu.matmul %14, %17, %cst {dimension_numbers = #tpu.dot_dimension_numbers<[1], [0], [0], [1], [0, 0, 1, 1], [], []>} : vector<8x128xf32>, vector<128x128xf32>, vector<8x128xf32> -> vector<8x128xf32>
    %c0_4 = arith.constant 0 : index
    %c0_5 = arith.constant 0 : index
    %19 = vector.load %arg2[%c0_4, %c0_5] : memref<14x256xf32, #tpu.memory_space<vmem>>, vector<1x128xf32>
    %c1 = arith.constant 1 : index
    %c0_6 = arith.constant 0 : index
    %20 = vector.load %arg2[%c1, %c0_6] : memref<14x256xf32, #tpu.memory_space<vmem>>, vector<1x128xf32>
    %21 = vector.broadcast %19 : vector<1x128xf32> to vector<8x128xf32>
    %22 = arith.mulf %18, %21 : vector<8x128xf32>
    %23 = vector.broadcast %20 : vector<1x128xf32> to vector<8x128xf32>
    %24 = arith.addf %22, %23 : vector<8x128xf32>
    %cst_7 = arith.constant 0.000000e+00 : f32
    %25 = vector.broadcast %cst_7 : f32 to vector<8x128xf32>
    %26 = arith.maximumf %24, %25 : vector<8x128xf32>
    %c1_i32_8 = arith.constant 1 : i32
    %27 = tpu.memref_slice %arg18[%c1_i32_8] : memref<7x!tpu.dma_semaphore, #tpu.memory_space<semaphore_mem>> -> memref<1x!tpu.dma_semaphore, #tpu.memory_space<semaphore_mem>>
    %28 = tpu.memref_squeeze %27 : memref<1x!tpu.dma_semaphore, #tpu.memory_space<semaphore_mem>> -> memref<!tpu.dma_semaphore, #tpu.memory_space<semaphore_mem>>
    tpu.wait_dma2 semaphore(%28 : memref<!tpu.dma_semaphore, #tpu.memory_space<semaphore_mem>>) src(%arg4 : memref<128x256xf32, #tpu.memory_space<any>>) dst(%arg12 : memref<128x256xf32, #tpu.memory_space<vmem>>)
    %c0_9 = arith.constant 0 : index
    %c0_10 = arith.constant 0 : index
    %29 = vector.load %arg12[%c0_9, %c0_10] : memref<128x256xf32, #tpu.memory_space<vmem>>, vector<128x256xf32>
    %cst_11 = arith.constant dense<0.000000e+00> : vector<8x256xf32>
    %30 = tpu.matmul %26, %29, %cst_11 {dimension_numbers = #tpu.dot_dimension_numbers<[1], [0], [0], [1], [0, 0, 1, 1], [], []>} : vector<8x128xf32>, vector<128x256xf32>, vector<8x256xf32> -> vector<8x256xf32>
    %c2 = arith.constant 2 : index
    %c0_12 = arith.constant 0 : index
    %31 = vector.load %arg2[%c2, %c0_12] : memref<14x256xf32, #tpu.memory_space<vmem>>, vector<1x256xf32>
    %c3 = arith.constant 3 : index
    %c0_13 = arith.constant 0 : index
    %32 = vector.load %arg2[%c3, %c0_13] : memref<14x256xf32, #tpu.memory_space<vmem>>, vector<1x256xf32>
    %33 = vector.broadcast %31 : vector<1x256xf32> to vector<8x256xf32>
    %34 = arith.mulf %30, %33 : vector<8x256xf32>
    %35 = vector.broadcast %32 : vector<1x256xf32> to vector<8x256xf32>
    %36 = arith.addf %34, %35 : vector<8x256xf32>
    %37 = vector.extract_strided_slice %36 {offsets = [0, 0], sizes = [8, 128], strides = [1, 1]} : vector<8x256xf32> to vector<8x128xf32>
    %cst_14 = arith.constant 0.000000e+00 : f32
    %38 = vector.broadcast %cst_14 : f32 to vector<8x128xf32>
    %39 = arith.maximumf %37, %38 : vector<8x128xf32>
    %40 = vector.extract_strided_slice %36 {offsets = [0, 128], sizes = [8, 128], strides = [1, 1]} : vector<8x256xf32> to vector<8x128xf32>
    %41 = arith.addf %39, %40 : vector<8x128xf32>
    %c2_i32_15 = arith.constant 2 : i32
    %42 = tpu.memref_slice %arg18[%c2_i32_15] : memref<7x!tpu.dma_semaphore, #tpu.memory_space<semaphore_mem>> -> memref<1x!tpu.dma_semaphore, #tpu.memory_space<semaphore_mem>>
    %43 = tpu.memref_squeeze %42 : memref<1x!tpu.dma_semaphore, #tpu.memory_space<semaphore_mem>> -> memref<!tpu.dma_semaphore, #tpu.memory_space<semaphore_mem>>
    tpu.wait_dma2 semaphore(%43 : memref<!tpu.dma_semaphore, #tpu.memory_space<semaphore_mem>>) src(%arg5 : memref<128x128xf32, #tpu.memory_space<any>>) dst(%arg13 : memref<128x128xf32, #tpu.memory_space<vmem>>)
    %c0_16 = arith.constant 0 : index
    %c0_17 = arith.constant 0 : index
    %44 = vector.load %arg13[%c0_16, %c0_17] : memref<128x128xf32, #tpu.memory_space<vmem>>, vector<128x128xf32>
    %cst_18 = arith.constant dense<0.000000e+00> : vector<8x128xf32>
    %45 = tpu.matmul %41, %44, %cst_18 {dimension_numbers = #tpu.dot_dimension_numbers<[1], [0], [0], [1], [0, 0, 1, 1], [], []>} : vector<8x128xf32>, vector<128x128xf32>, vector<8x128xf32> -> vector<8x128xf32>
    %c4 = arith.constant 4 : index
    %c0_19 = arith.constant 0 : index
    %46 = vector.load %arg2[%c4, %c0_19] : memref<14x256xf32, #tpu.memory_space<vmem>>, vector<1x128xf32>
    %c5 = arith.constant 5 : index
    %c0_20 = arith.constant 0 : index
    %47 = vector.load %arg2[%c5, %c0_20] : memref<14x256xf32, #tpu.memory_space<vmem>>, vector<1x128xf32>
    %48 = vector.broadcast %46 : vector<1x128xf32> to vector<8x128xf32>
    %49 = arith.mulf %45, %48 : vector<8x128xf32>
    %50 = vector.broadcast %47 : vector<1x128xf32> to vector<8x128xf32>
    %51 = arith.addf %49, %50 : vector<8x128xf32>
    %cst_21 = arith.constant 0.000000e+00 : f32
    %52 = vector.broadcast %cst_21 : f32 to vector<8x128xf32>
    %53 = arith.maximumf %51, %52 : vector<8x128xf32>
    %54 = arith.addf %53, %41 : vector<8x128xf32>
    %c3_i32_22 = arith.constant 3 : i32
    %55 = tpu.memref_slice %arg18[%c3_i32_22] : memref<7x!tpu.dma_semaphore, #tpu.memory_space<semaphore_mem>> -> memref<1x!tpu.dma_semaphore, #tpu.memory_space<semaphore_mem>>
    %56 = tpu.memref_squeeze %55 : memref<1x!tpu.dma_semaphore, #tpu.memory_space<semaphore_mem>> -> memref<!tpu.dma_semaphore, #tpu.memory_space<semaphore_mem>>
    tpu.wait_dma2 semaphore(%56 : memref<!tpu.dma_semaphore, #tpu.memory_space<semaphore_mem>>) src(%arg6 : memref<128x256xf32, #tpu.memory_space<any>>) dst(%arg14 : memref<128x256xf32, #tpu.memory_space<vmem>>)
    %c0_23 = arith.constant 0 : index
    %c0_24 = arith.constant 0 : index
    %57 = vector.load %arg14[%c0_23, %c0_24] : memref<128x256xf32, #tpu.memory_space<vmem>>, vector<128x256xf32>
    %cst_25 = arith.constant dense<0.000000e+00> : vector<8x256xf32>
    %58 = tpu.matmul %54, %57, %cst_25 {dimension_numbers = #tpu.dot_dimension_numbers<[1], [0], [0], [1], [0, 0, 1, 1], [], []>} : vector<8x128xf32>, vector<128x256xf32>, vector<8x256xf32> -> vector<8x256xf32>
    %c6 = arith.constant 6 : index
    %c0_26 = arith.constant 0 : index
    %59 = vector.load %arg2[%c6, %c0_26] : memref<14x256xf32, #tpu.memory_space<vmem>>, vector<1x256xf32>
    %c7 = arith.constant 7 : index
    %c0_27 = arith.constant 0 : index
    %60 = vector.load %arg2[%c7, %c0_27] : memref<14x256xf32, #tpu.memory_space<vmem>>, vector<1x256xf32>
    %61 = vector.broadcast %59 : vector<1x256xf32> to vector<8x256xf32>
    %62 = arith.mulf %58, %61 : vector<8x256xf32>
    %63 = vector.broadcast %60 : vector<1x256xf32> to vector<8x256xf32>
    %64 = arith.addf %62, %63 : vector<8x256xf32>
    %65 = vector.extract_strided_slice %64 {offsets = [0, 0], sizes = [8, 128], strides = [1, 1]} : vector<8x256xf32> to vector<8x128xf32>
    %cst_28 = arith.constant 0.000000e+00 : f32
    %66 = vector.broadcast %cst_28 : f32 to vector<8x128xf32>
    %67 = arith.maximumf %65, %66 : vector<8x128xf32>
    %68 = vector.extract_strided_slice %64 {offsets = [0, 128], sizes = [8, 128], strides = [1, 1]} : vector<8x256xf32> to vector<8x128xf32>
    %69 = arith.addf %67, %68 : vector<8x128xf32>
    %c4_i32_29 = arith.constant 4 : i32
    %70 = tpu.memref_slice %arg18[%c4_i32_29] : memref<7x!tpu.dma_semaphore, #tpu.memory_space<semaphore_mem>> -> memref<1x!tpu.dma_semaphore, #tpu.memory_space<semaphore_mem>>
    %71 = tpu.memref_squeeze %70 : memref<1x!tpu.dma_semaphore, #tpu.memory_space<semaphore_mem>> -> memref<!tpu.dma_semaphore, #tpu.memory_space<semaphore_mem>>
    tpu.wait_dma2 semaphore(%71 : memref<!tpu.dma_semaphore, #tpu.memory_space<semaphore_mem>>) src(%arg7 : memref<128x128xf32, #tpu.memory_space<any>>) dst(%arg15 : memref<128x128xf32, #tpu.memory_space<vmem>>)
    %c0_30 = arith.constant 0 : index
    %c0_31 = arith.constant 0 : index
    %72 = vector.load %arg15[%c0_30, %c0_31] : memref<128x128xf32, #tpu.memory_space<vmem>>, vector<128x128xf32>
    %cst_32 = arith.constant dense<0.000000e+00> : vector<8x128xf32>
    %73 = tpu.matmul %69, %72, %cst_32 {dimension_numbers = #tpu.dot_dimension_numbers<[1], [0], [0], [1], [0, 0, 1, 1], [], []>} : vector<8x128xf32>, vector<128x128xf32>, vector<8x128xf32> -> vector<8x128xf32>
    %c8 = arith.constant 8 : index
    %c0_33 = arith.constant 0 : index
    %74 = vector.load %arg2[%c8, %c0_33] : memref<14x256xf32, #tpu.memory_space<vmem>>, vector<1x128xf32>
    %c9 = arith.constant 9 : index
    %c0_34 = arith.constant 0 : index
    %75 = vector.load %arg2[%c9, %c0_34] : memref<14x256xf32, #tpu.memory_space<vmem>>, vector<1x128xf32>
    %76 = vector.broadcast %74 : vector<1x128xf32> to vector<8x128xf32>
    %77 = arith.mulf %73, %76 : vector<8x128xf32>
    %78 = vector.broadcast %75 : vector<1x128xf32> to vector<8x128xf32>
    %79 = arith.addf %77, %78 : vector<8x128xf32>
    %cst_35 = arith.constant 0.000000e+00 : f32
    %80 = vector.broadcast %cst_35 : f32 to vector<8x128xf32>
    %81 = arith.maximumf %79, %80 : vector<8x128xf32>
    %c5_i32_36 = arith.constant 5 : i32
    %82 = tpu.memref_slice %arg18[%c5_i32_36] : memref<7x!tpu.dma_semaphore, #tpu.memory_space<semaphore_mem>> -> memref<1x!tpu.dma_semaphore, #tpu.memory_space<semaphore_mem>>
    %83 = tpu.memref_squeeze %82 : memref<1x!tpu.dma_semaphore, #tpu.memory_space<semaphore_mem>> -> memref<!tpu.dma_semaphore, #tpu.memory_space<semaphore_mem>>
    tpu.wait_dma2 semaphore(%83 : memref<!tpu.dma_semaphore, #tpu.memory_space<semaphore_mem>>) src(%arg8 : memref<128x128xf32, #tpu.memory_space<any>>) dst(%arg16 : memref<128x128xf32, #tpu.memory_space<vmem>>)
    %c0_37 = arith.constant 0 : index
    %c0_38 = arith.constant 0 : index
    %84 = vector.load %arg16[%c0_37, %c0_38] : memref<128x128xf32, #tpu.memory_space<vmem>>, vector<128x128xf32>
    %cst_39 = arith.constant dense<0.000000e+00> : vector<8x128xf32>
    %85 = tpu.matmul %81, %84, %cst_39 {dimension_numbers = #tpu.dot_dimension_numbers<[1], [0], [0], [1], [0, 0, 1, 1], [], []>} : vector<8x128xf32>, vector<128x128xf32>, vector<8x128xf32> -> vector<8x128xf32>
    %c10 = arith.constant 10 : index
    %c0_40 = arith.constant 0 : index
    %86 = vector.load %arg2[%c10, %c0_40] : memref<14x256xf32, #tpu.memory_space<vmem>>, vector<1x128xf32>
    %c11 = arith.constant 11 : index
    %c0_41 = arith.constant 0 : index
    %87 = vector.load %arg2[%c11, %c0_41] : memref<14x256xf32, #tpu.memory_space<vmem>>, vector<1x128xf32>
    %88 = vector.broadcast %86 : vector<1x128xf32> to vector<8x128xf32>
    %89 = arith.mulf %85, %88 : vector<8x128xf32>
    %90 = vector.broadcast %87 : vector<1x128xf32> to vector<8x128xf32>
    %91 = arith.addf %89, %90 : vector<8x128xf32>
    %92 = arith.negf %91 : vector<8x128xf32>
    %93 = math.exp %92 : vector<8x128xf32>
    %cst_42 = arith.constant 1.000000e+00 : f32
    %94 = vector.broadcast %cst_42 : f32 to vector<8x128xf32>
    %95 = arith.addf %94, %93 : vector<8x128xf32>
    %96 = arith.divf %94, %95 : vector<8x128xf32>
    %97 = arith.mulf %69, %96 : vector<8x128xf32>
    %c6_i32_43 = arith.constant 6 : i32
    %98 = tpu.memref_slice %arg18[%c6_i32_43] : memref<7x!tpu.dma_semaphore, #tpu.memory_space<semaphore_mem>> -> memref<1x!tpu.dma_semaphore, #tpu.memory_space<semaphore_mem>>
    %99 = tpu.memref_squeeze %98 : memref<1x!tpu.dma_semaphore, #tpu.memory_space<semaphore_mem>> -> memref<!tpu.dma_semaphore, #tpu.memory_space<semaphore_mem>>
    tpu.wait_dma2 semaphore(%99 : memref<!tpu.dma_semaphore, #tpu.memory_space<semaphore_mem>>) src(%arg9 : memref<128x128xf32, #tpu.memory_space<any>>) dst(%arg17 : memref<128x128xf32, #tpu.memory_space<vmem>>)
    %c0_44 = arith.constant 0 : index
    %c0_45 = arith.constant 0 : index
    %100 = vector.load %arg17[%c0_44, %c0_45] : memref<128x128xf32, #tpu.memory_space<vmem>>, vector<128x128xf32>
    %cst_46 = arith.constant dense<0.000000e+00> : vector<8x128xf32>
    %101 = tpu.matmul %97, %100, %cst_46 {dimension_numbers = #tpu.dot_dimension_numbers<[1], [0], [0], [1], [0, 0, 1, 1], [], []>} : vector<8x128xf32>, vector<128x128xf32>, vector<8x128xf32> -> vector<8x128xf32>
    %c12 = arith.constant 12 : index
    %c0_47 = arith.constant 0 : index
    %102 = vector.load %arg2[%c12, %c0_47] : memref<14x256xf32, #tpu.memory_space<vmem>>, vector<1x128xf32>
    %c13 = arith.constant 13 : index
    %c0_48 = arith.constant 0 : index
    %103 = vector.load %arg2[%c13, %c0_48] : memref<14x256xf32, #tpu.memory_space<vmem>>, vector<1x128xf32>
    %104 = vector.broadcast %102 : vector<1x128xf32> to vector<8x128xf32>
    %105 = arith.mulf %101, %104 : vector<8x128xf32>
    %106 = vector.broadcast %103 : vector<1x128xf32> to vector<8x128xf32>
    %107 = arith.addf %105, %106 : vector<8x128xf32>
    %c0_49 = arith.constant 0 : index
    %c0_50 = arith.constant 0 : index
    %108 = vector.load %arg10[%c0_49, %c0_50] : memref<8x128xf32, #tpu.memory_space<vmem>>, vector<8x128xf32>
    tpu.vector_store %arg10[%c0_49, %c0_50], %107 {strides = array<i32>} : memref<8x128xf32, #tpu.memory_space<vmem>>, vector<8x128xf32>,
    return
  }
  func.func @transform_0(%arg0: i32) -> (i32, i32) {
    %c0_i32 = arith.constant 0 : i32
    %c0_i32_0 = arith.constant 0 : i32
    %c0_i32_1 = arith.constant 0 : i32
    return %c0_i32, %c0_i32_0 : i32, i32
  }
  func.func @transform_1(%arg0: i32) -> (i32, i32) {
    %c0_i32 = arith.constant 0 : i32
    %c0_i32_0 = arith.constant 0 : i32
    %c0_i32_1 = arith.constant 0 : i32
    return %c0_i32, %c0_i32_0 : i32, i32
  }
  func.func @transform_9(%arg0: i32) -> (i32, i32) {
    %c0_i32 = arith.constant 0 : i32
    %c0_i32_0 = arith.constant 0 : i32
    %c0_i32_1 = arith.constant 0 : i32
    return %c0_i32, %c0_i32_0 : i32, i32
  }
}

</mosaic_0001>

<bundles_post_ra>
// kernel: forward.1
= control target key start
LH: loop header
LB: loop body
LE: loop exit
PB: predicated region body
PF: predicated region fallthrough
CT: control target
= control target key end

     0   :  { %14 = vsyncpa [#allocation11], 0  ;;  %s1869_s0 = inlined_call_operand.vmem [shape: f32[8,128], index: 0, kind: input, shape index: {}]   ;;  %s1870_s1 = inlined_call_operand.hbm [shape: f32[14,256], index: 1, kind: input, shape index: {}]   ;;  %s1871_s2 = inlined_call_operand.hbm [shape: f32[128,128], index: 2, kind: input, shape index: {}]   ;;  %s1872_s3 = inlined_call_operand.hbm [shape: f32[128,256], index: 3, kind: input, shape index: {}]   ;;  %s1873_s4 = inlined_call_operand.hbm [shape: f32[128,128], index: 4, kind: input, shape index: {}]   ;;  %s1874_s5 = inlined_call_operand.hbm [shape: f32[128,256], index: 5, kind: input, shape index: {}]   ;;  %s1875_s6 = inlined_call_operand.hbm [shape: f32[128,128], index: 6, kind: input, shape index: {}]   ;;  %s1876_s7 = inlined_call_operand.hbm [shape: f32[128,128], index: 7, kind: input, shape index: {}]   ;;  %s1877_s8 = inlined_call_operand.hbm [shape: f32[128,128], index: 8, kind: input, shape index: {}]   ;;  %s1878_s9 = inlined_call_operand.hbm [shape: f32[8,128], index: 9, kind: output, shape index: {}]  }
   0x1   :  { %15 = vsyncpa [#allocation12], 0  ;;  %s1615_s30 = smov [#allocation10]   ;;  %s1399_s13 = scalar_lea.hbm %s1870_s1, 512 }
   0x2   :  { %s23_s10 = sshll.u32 %s1615_s30, 4  ;;  %p1400_p0 = scmp.ne.s32.totalorder %s1870_s1, %s1399_s13  ;;  %s24_s10 = int_to_ptr.vmem [resolvable:$true] %s23_s10 }
   0x3   :  { %p1403_p1 = scmp.lt.u32.totalorder %s1399_s13, %s1870_s1 }
   0x5   :  { %p1405_p2 = pnand %p1403_p1, %p1400_p0 }
   0x7   :  { %1408 = shalt.err (!%p1405_p2)
}
   0x8   :  { %s1409_s18 = scalar_lea.vmem %s24_s10, 512  ;;  %p1414_p4 = scmp.lt.s32.totalorder %s24_s10, %s24_s10 }
   0x9   :  { %p1410_p3 = scmp.ne.s32.totalorder %s24_s10, %s1409_s18  ;;  %p1415_p5 = scmp.lt.s32.totalorder %s1409_s18, %s1409_s18 }
   0xb   :  { %p1416_p6 = por %p1415_p5, %p1414_p4 }
   0xd   :  { %p1417_p7 = pnand %p1416_p6, %p1410_p3 }
   0xf   :  { %1420 = shalt.err (!%p1417_p7)
}
  0x10   :  { %s1616_s19 = smov 256   ;;  %s1617_s20 = smov 16  }
  0x11   :  { %29 = dma.hbm_to_vmem [thread:$0]  %s1870_s1, 512, %s24_s10, [#allocation11], %s1616_s19, %s1616_s19, %s1617_s20  }
  0x12   :  { %1597 = dma.done.wait [#allocation11], 512  }
  0x13   :  { %1598 = vsyncadd [#allocation11], 4294966784  ;;  %s1618_s23 = smov [#allocation2]   ;;  %s1619_s25 = smov [#allocation3]  }
  0x14   :  { %s40_s24 = sshll.u32 %s1618_s23, 4  ;;  %s52_s26 = sshll.u32 %s1619_s25, 4  ;;  %s41_s24 = int_to_ptr.vmem [resolvable:$true] %s40_s24  ;;  %s53_s26 = int_to_ptr.vmem [resolvable:$true] %s52_s26 }
  0x15   :  { %s1421_s29 = scalar_lea.hbm %s1871_s2, 2048 }
  0x16   :  { %p1422_p8 = scmp.ne.s32.totalorder %s1871_s2, %s1421_s29  ;;  %p1425_p9 = scmp.lt.u32.totalorder %s1421_s29, %s1871_s2 }
  0x18   :  { %p1427_p10 = pnand %p1425_p9, %p1422_p8 }
  0x1a   :  { %1430 = shalt.err (!%p1427_p10)  }
  0x1b   :  { %s1431_s1 = scalar_lea.vmem %s41_s24, 2048  ;;  %p1436_p12 = scmp.lt.s32.totalorder %s41_s24, %s41_s24 }
  0x1c   :  { %p1432_p11 = scmp.ne.s32.totalorder %s41_s24, %s1431_s1  ;;  %p1437_p13 = scmp.lt.s32.totalorder %s1431_s1, %s1431_s1 }
  0x1e   :  { %p1438_p0 = por %p1437_p13, %p1436_p12 }
  0x20   :  { %p1439_p1 = pnand %p1438_p0, %p1432_p11 }
  0x22   :  { %1442 = shalt.err (!%p1439_p1)  }
  0x23   :  { %43 = dma.hbm_to_vmem [thread:$0]  %s1871_s2, 2048, %s41_s24, [#allocation9] }
  0x24   :  { %s1443_s17 = scalar_lea.hbm %s1872_s3, 4096 }
  0x25   :  { %p1444_p2 = scmp.ne.s32.totalorder %s1872_s3, %s1443_s17  ;;  %p1447_p3 = scmp.lt.u32.totalorder %s1443_s17, %s1872_s3 }
  0x27   :  { %p1449_p4 = pnand %p1447_p3, %p1444_p2 }
  0x29   :  { %1452 = shalt.err (!%p1449_p4)  }
  0x2a   :  { %s1453_s22 = scalar_lea.vmem %s53_s26, 4096  ;;  %p1458_p6 = scmp.lt.s32.totalorder %s53_s26, %s53_s26 }
  0x2b   :  { %p1454_p5 = scmp.ne.s32.totalorder %s53_s26, %s1453_s22  ;;  %p1459_p7 = scmp.lt.s32.totalorder %s1453_s22, %s1453_s22 }
  0x2d   :  { %p1460_p8 = por %p1459_p7, %p1458_p6 }
  0x2f   :  { %p1461_p9 = pnand %p1460_p8, %p1454_p5 }
  0x31   :  { %1464 = shalt.err (!%p1461_p9)  }
  0x32   :  { %55 = dma.hbm_to_vmem [thread:$0]  %s1872_s3, 4096, %s53_s26, [#allocation9 + $0x1]  ;;  %v1718_v0 = vld [vmem:[%s1869_s0] sm:$0xff] }
  0x33   :  { %s1620_s24 = smov [#allocation4]   ;;  %s1621_s27 = smov [#allocation5]  }
  0x34   :  { %s64_s25 = sshll.u32 %s1620_s24, 4  ;;  %s76_s28 = sshll.u32 %s1621_s27, 4  ;;  %s65_s25 = int_to_ptr.vmem [resolvable:$true] %s64_s25  ;;  %s77_s28 = int_to_ptr.vmem [resolvable:$true] %s76_s28 }
  0x35   :  { %s1465_s13 = scalar_lea.hbm %s1873_s4, 2048 }
  0x36   :  { %p1466_p10 = scmp.ne.s32.totalorder %s1873_s4, %s1465_s13  ;;  %p1469_p11 = scmp.lt.u32.totalorder %s1465_s13, %s1873_s4 }
  0x38   :  { %p1471_p12 = pnand %p1469_p11, %p1466_p10 }
  0x3a   :  { %1474 = shalt.err (!%p1471_p12)  }
  0x3b   :  { %s1475_s14 = scalar_lea.vmem %s65_s25, 2048  ;;  %p1480_p0 = scmp.lt.s32.totalorder %s65_s25, %s65_s25 }
  0x3c   :  { %p1476_p13 = scmp.ne.s32.totalorder %s65_s25, %s1475_s14  ;;  %p1481_p1 = scmp.lt.s32.totalorder %s1475_s14, %s1475_s14 }
  0x3e   :  { %p1482_p2 = por %p1481_p1, %p1480_p0 }
  0x40   :  { %p1483_p3 = pnand %p1482_p2, %p1476_p13 }
  0x42   :  { %1486 = shalt.err (!%p1483_p3)  }
  0x43   :  { %67 = dma.hbm_to_vmem [thread:$0]  %s1873_s4, 2048, %s65_s25, [#allocation9 + $0x2] }
  0x44   :  { %s1487_s18 = scalar_lea.hbm %s1874_s5, 4096 }
  0x45   :  { %p1488_p4 = scmp.ne.s32.totalorder %s1874_s5, %s1487_s18  ;;  %p1491_p5 = scmp.lt.u32.totalorder %s1487_s18, %s1874_s5 }
  0x47   :  { %p1493_p6 = pnand %p1491_p5, %p1488_p4 }
  0x49   :  { %1496 = shalt.err (!%p1493_p6)  }
  0x4a   :  { %s1497_s2 = scalar_lea.vmem %s77_s28, 4096  ;;  %p1502_p8 = scmp.lt.s32.totalorder %s77_s28, %s77_s28 }
  0x4b   :  { %p1498_p7 = scmp.ne.s32.totalorder %s77_s28, %s1497_s2  ;;  %p1503_p9 = scmp.lt.s32.totalorder %s1497_s2, %s1497_s2 }
  0x4d   :  { %p1504_p10 = por %p1503_p9, %p1502_p8 }
  0x4f   :  { %p1505_p11 = pnand %p1504_p10, %p1498_p7 }
  0x51   :  { %1508 = shalt.err (!%p1505_p11)  }
  0x52   :  { %79 = dma.hbm_to_vmem [thread:$0]  %s1874_s5, 4096, %s77_s28, [#allocation9 + $0x3] }
  0x53   :  { %s1622_s24 = smov [#allocation6]   ;;  %s1623_s27 = smov [#allocation7]  }
  0x54   :  { %s88_s25 = sshll.u32 %s1622_s24, 4  ;;  %s100_s29 = sshll.u32 %s1623_s27, 4  ;;  %s89_s25 = int_to_ptr.vmem [resolvable:$true] %s88_s25  ;;  %s101_s29 = int_to_ptr.vmem [resolvable:$true] %s100_s29 }
  0x55   :  { %s1509_s12 = scalar_lea.hbm %s1875_s6, 2048 }
  0x56   :  { %p1510_p12 = scmp.ne.s32.totalorder %s1875_s6, %s1509_s12  ;;  %p1513_p13 = scmp.lt.u32.totalorder %s1509_s12, %s1875_s6 }
  0x58   :  { %p1515_p0 = pnand %p1513_p13, %p1510_p12 }
  0x5a   :  { %1518 = shalt.err (!%p1515_p0)  }
  0x5b   :  { %s1519_s5 = scalar_lea.vmem %s89_s25, 2048  ;;  %p1524_p2 = scmp.lt.s32.totalorder %s89_s25, %s89_s25 }
  0x5c   :  { %p1520_p1 = scmp.ne.s32.totalorder %s89_s25, %s1519_s5  ;;  %p1525_p3 = scmp.lt.s32.totalorder %s1519_s5, %s1519_s5 }
  0x5e   :  { %p1526_p4 = por %p1525_p3, %p1524_p2 }
  0x60   :  { %p1527_p5 = pnand %p1526_p4, %p1520_p1 }
  0x62   :  { %1530 = shalt.err (!%p1527_p5)  }
  0x63   :  { %91 = dma.hbm_to_vmem [thread:$0]  %s1875_s6, 2048, %s89_s25, [#allocation9 + $0x4] }
  0x64   :  { %s1531_s15 = scalar_lea.hbm %s1876_s7, 2048 }
  0x65   :  { %p1532_p6 = scmp.ne.s32.totalorder %s1876_s7, %s1531_s15  ;;  %p1535_p7 = scmp.lt.u32.totalorder %s1531_s15, %s1876_s7 }
  0x67   :  { %p1537_p8 = pnand %p1535_p7, %p1532_p6 }
  0x69   :  { %1540 = shalt.err (!%p1537_p8)  }
  0x6a   :  { %s1541_s20 = scalar_lea.vmem %s101_s29, 2048  ;;  %p1546_p10 = scmp.lt.s32.totalorder %s101_s29, %s101_s29 }
  0x6b   :  { %p1542_p9 = scmp.ne.s32.totalorder %s101_s29, %s1541_s20  ;;  %p1547_p11 = scmp.lt.s32.totalorder %s1541_s20, %s1541_s20 }
  0x6d   :  { %p1548_p12 = por %p1547_p11, %p1546_p10 }
  0x6f   :  { %p1549_p13 = pnand %p1548_p12, %p1542_p9 }
  0x71   :  { %1552 = shalt.err (!%p1549_p13)  }
  0x72   :  { %103 = dma.hbm_to_vmem [thread:$0]  %s1876_s7, 2048, %s101_s29, [#allocation9 + $0x5] }
  0x73   :  { %s1624_s22 = smov [#allocation8]   ;;  %s1553_s24 = scalar_lea.hbm %s1877_s8, 2048 }
  0x74   :  { %s112_s2 = sshll.u32 %s1624_s22, 4  ;;  %p1554_p0 = scmp.ne.s32.totalorder %s1877_s8, %s1553_s24  ;;  %s113_s2 = int_to_ptr.vmem [resolvable:$true] %s112_s2 }
  0x75   :  { %p1557_p1 = scmp.lt.u32.totalorder %s1553_s24, %s1877_s8 }
  0x77   :  { %p1559_p2 = pnand %p1557_p1, %p1554_p0 }
  0x79   :  { %1562 = shalt.err (!%p1559_p2)  }
  0x7a   :  { %s1563_s12 = scalar_lea.vmem %s113_s2, 2048  ;;  %p1568_p4 = scmp.lt.s32.totalorder %s113_s2, %s113_s2 }
  0x7b   :  { %p1564_p3 = scmp.ne.s32.totalorder %s113_s2, %s1563_s12  ;;  %p1569_p5 = scmp.lt.s32.totalorder %s1563_s12, %s1563_s12 }
  0x7d   :  { %p1570_p6 = por %p1569_p5, %p1568_p4 }
  0x7f   :  { %p1571_p7 = pnand %p1570_p6, %p1564_p3 }
  0x81   :  { %1574 = shalt.err (!%p1571_p7)  }
  0x82   :  { %115 = dma.hbm_to_vmem [thread:$0]  %s1877_s8, 2048, %s113_s2, [#allocation9 + $0x6] }
  0x83   :  { %1599 = dma.done.wait [#allocation9], 2048 }
  0x84   :  { %1600 = vsyncadd [#allocation9], 4294965248  ;;  %v1625_v1 = vmov 0.0|0.0   ;;  %vm1626_vm0 = vmmov 0   ;;  %v1627_v2 = vmov 0.0   ;;  %v120_v3 = vld [vmem:[#allocation2] sm:$0xff] }
  0x85   :  { %1197 = vmatprep.subr.bf16.mxu0 %v1625_v1  ;;  %1054 = vmatprep.mubr.msk.f32.mxu0 %vm1626_vm0, %v1627_v2  ;;  %v121_v4 = vld [vmem:[#allocation2 + $0x8] sm:$0xff]  ;;  %v122_v5 = vld [vmem:[#allocation2 + $0x10] sm:$0xff]  ;;  %v123_v7 = vld [vmem:[#allocation2 + $0x18] sm:$0xff] }
  0x86   :  { %v1198_v6 = vpack.c.bf16 %v121_v4, %v120_v3  ;;  %v1201_v8 = vpack.c.bf16 %v123_v7, %v122_v5  ;;  %v124_v9 = vld [vmem:[#allocation2 + $0x20] sm:$0xff]  ;;  %v125_v10 = vld [vmem:[#allocation2 + $0x28] sm:$0xff]  ;;  %v126_v12 = vld [vmem:[#allocation2 + $0x30] sm:$0xff] }
  0x87   :  { %v1204_v11 = vpack.c.bf16 %v125_v10, %v124_v9  ;;  %v127_v13 = vld [vmem:[#allocation2 + $0x38] sm:$0xff]  ;;  %v128_v15 = vld [vmem:[#allocation2 + $0x40] sm:$0xff]  ;;  %v129_v16 = vld [vmem:[#allocation2 + $0x48] sm:$0xff] }
  0x88   :  { %1199 = vmatpush3.bf16.msra.mxu0 %v1198_v6  ;;  %v1207_v14 = vpack.c.bf16 %v127_v13, %v126_v12  ;;  %v1210_v17 = vpack.c.bf16 %v129_v16, %v128_v15  ;;  %v130_v18 = vld [vmem:[#allocation2 + $0x50] sm:$0xff]  ;;  %v131_v19 = vld [vmem:[#allocation2 + $0x58] sm:$0xff]  ;;  %v132_v21 = vld [vmem:[#allocation2 + $0x60] sm:$0xff] }
  0x89   :  { %1200 = vmatprep.subr.bf16.mxu0 %v1625_v1  ;;  %v1213_v20 = vpack.c.bf16 %v131_v19, %v130_v18  ;;  %v133_v22 = vld [vmem:[#allocation2 + $0x68] sm:$0xff]  ;;  %v134_v24 = vld [vmem:[#allocation2 + $0x70] sm:$0xff]  ;;  %v135_v25 = vld [vmem:[#allocation2 + $0x78] sm:$0xff] }
  0x8a   :  { %v1216_v23 = vpack.c.bf16 %v133_v22, %v132_v21  ;;  %v1219_v26 = vpack.c.bf16 %v135_v25, %v134_v24  ;;  %v206_v27 = vld [vmem:[#allocation10] ss:$0 sm:$0xff]  ;;  %v207_v29 = vld [vmem:[#allocation10 + $0x1] ss:$0 sm:$0xff] }
  0x8c   :  { %1202 = vmatpush3.bf16.msra.mxu0 %v1201_v8 }
  0x8d   :  { %1203 = vmatprep.subr.bf16.mxu0 %v1625_v1 }
  0x90   :  { %1205 = vmatpush3.bf16.msra.mxu0 %v1204_v11 }
  0x91   :  { %1206 = vmatprep.subr.bf16.mxu0 %v1625_v1 }
  0x94   :  { %1208 = vmatpush3.bf16.msra.mxu0 %v1207_v14 }
  0x95   :  { %1209 = vmatprep.subr.bf16.mxu0 %v1625_v1 }
  0x98   :  { %1211 = vmatpush3.bf16.msra.mxu0 %v1210_v17 }
  0x99   :  { %1212 = vmatprep.subr.bf16.mxu0 %v1625_v1 }
  0x9c   :  { %1214 = vmatpush3.bf16.msra.mxu0 %v1213_v20 }
  0x9d   :  { %1215 = vmatprep.subr.bf16.mxu0 %v1625_v1 }
  0xa0   :  { %1217 = vmatpush3.bf16.msra.mxu0 %v1216_v23 }
  0xa1   :  { %1218 = vmatprep.subr.bf16.mxu0 %v1625_v1 }
  0xa4   :  { %1220 = vmatpush3.bf16.msra.mxu0 %v1219_v26 }
  0xa7   :  { %1055 = vmatmul.mubr.f32.vlgmr.msra.gmra.mrb[0].mxu0 %v1718_v0 }
 0x17a   :  { %v202_v28 = vpop.f32.mrb[0].mxu0 }
 0x17b   :  { %v208_v30 = vmul.f32 %v206_v27, %v202_v28  ;;  %v1056_v31 = vpop.f32.mrb[1].mxu0 }
 0x17d   :  { %v1791_v32 = vadd.f32 %v208_v30, %v207_v29 }
 0x17f   :  { %v210_v33 = vmax.f32 %v1791_v32, 0.0 }
 0x180   :  { %1601 = dma.done.wait [#allocation9 + $0x1], 4096 }
 0x181   :  { %1602 = vsyncadd [#allocation9 + $0x1], 4294963200  ;;  %311 = vmatprep.mubr.f32.mxu1 %v1627_v2  ;;  %v216_v34 = vld [vmem:[#allocation3 + $0x8] sm:$0xff]  ;;  %v218_v35 = vld [vmem:[#allocation3 + $0x18] sm:$0xff]  ;;  %v323_v20 = vlaneseq }
 0x182   :  { %v215_v36 = vld [vmem:[#allocation3] sm:$0xff]  ;;  %v1221_v37 = vpack.c.bf16 %v218_v35, %v216_v34  ;;  %v217_v38 = vld [vmem:[#allocation3 + $0x10] sm:$0xff]  ;;  %v220_v39 = vld [vmem:[#allocation3 + $0x28] sm:$0xff] }
 0x183   :  { %v222_v40 = vld [vmem:[#allocation3 + $0x38] sm:$0xff]  ;;  %v1223_v41 = vpack.c.bf16 %v217_v38, %v215_v36  ;;  %v219_v43 = vld [vmem:[#allocation3 + $0x20] sm:$0xff]  ;;  %v221_v44 = vld [vmem:[#allocation3 + $0x30] sm:$0xff]  ;;  %v324_v21 = vshrl.u32 %v323_v20, 7 }
 0x184   :  { %v1225_v42 = vpack.c.bf16 %v222_v40, %v220_v39  ;;  %v224_v45 = vld [vmem:[#allocation3 + $0x48] sm:$0xff]  ;;  %1222 = vmatprep.subr.bf16.mxu1 %v1221_v37  ;;  %v226_v46 = vld [vmem:[#allocation3 + $0x58] sm:$0xff]  ;;  %v1227_v47 = vpack.c.bf16 %v221_v44, %v219_v43  ;;  %v223_v49 = vld [vmem:[#allocation3 + $0x40] sm:$0xff] }
 0x185   :  { %1224 = vmatpush1.bf16.msra.mxu1 %v1223_v41  ;;  %v1229_v48 = vpack.c.bf16 %v226_v46, %v224_v45  ;;  %v225_v50 = vld [vmem:[#allocation3 + $0x50] sm:$0xff]  ;;  %v228_v51 = vld [vmem:[#allocation3 + $0x68] sm:$0xff]  ;;  %v230_v52 = vld [vmem:[#allocation3 + $0x78] sm:$0xff]  ;;  %v1797_v22 = vsub.s32 0, %v324_v21  ;;  %v1799_v24 = vsub.s32 1, %v324_v21 }
 0x186   :  { %1226 = vmatprep.subr.bf16.mxu1 %v1225_v42  ;;  %v1231_v53 = vpack.c.bf16 %v225_v50, %v223_v49  ;;  %v1233_v54 = vpack.c.bf16 %v230_v52, %v228_v51  ;;  %v227_v55 = vld [vmem:[#allocation3 + $0x60] sm:$0xff]  ;;  %v229_v56 = vld [vmem:[#allocation3 + $0x70] sm:$0xff]  ;;  %v232_v57 = vld [vmem:[#allocation3 + $0x88] sm:$0xff] }
 0x187   :  { %v234_v58 = vld [vmem:[#allocation3 + $0x98] sm:$0xff]  ;;  %v1235_v59 = vpack.c.bf16 %v229_v56, %v227_v55  ;;  %v231_v61 = vld [vmem:[#allocation3 + $0x80] sm:$0xff]  ;;  %v233_v62 = vld [vmem:[#allocation3 + $0x90] sm:$0xff] }
 0x188   :  { %v1237_v60 = vpack.c.bf16 %v234_v58, %v232_v57  ;;  %v236_v63 = vld [vmem:[#allocation3 + $0xa8] sm:$0xff]  ;;  %v238_v0 = vld [vmem:[#allocation3 + $0xb8] sm:$0xff]  ;;  %v1239_v3 = vpack.c.bf16 %v233_v62, %v231_v61  ;;  %v235_v5 = vld [vmem:[#allocation3 + $0xa0] sm:$0xff] }
 0x189   :  { %1228 = vmatpush1.bf16.msra.mxu1 %v1227_v47  ;;  %v1241_v4 = vpack.c.bf16 %v238_v0, %v236_v63  ;;  %v237_v6 = vld [vmem:[#allocation3 + $0xb0] sm:$0xff]  ;;  %v240_v7 = vld [vmem:[#allocation3 + $0xc8] sm:$0xff]  ;;  %v242_v8 = vld [vmem:[#allocation3 + $0xd8] sm:$0xff] }
 0x18a   :  { %1230 = vmatprep.subr.bf16.mxu1 %v1229_v48  ;;  %v1243_v9 = vpack.c.bf16 %v237_v6, %v235_v5  ;;  %v1245_v10 = vpack.c.bf16 %v242_v8, %v240_v7  ;;  %v239_v11 = vld [vmem:[#allocation3 + $0xc0] sm:$0xff]  ;;  %v241_v12 = vld [vmem:[#allocation3 + $0xd0] sm:$0xff]  ;;  %v244_v13 = vld [vmem:[#allocation3 + $0xe8] sm:$0xff] }
 0x18b   :  { %v246_v14 = vld [vmem:[#allocation3 + $0xf8] sm:$0xff]  ;;  %v1247_v15 = vpack.c.bf16 %v241_v12, %v239_v11  ;;  %v243_v17 = vld [vmem:[#allocation3 + $0xe0] sm:$0xff]  ;;  %v245_v18 = vld [vmem:[#allocation3 + $0xf0] sm:$0xff] }
 0x18c   :  { %v1249_v16 = vpack.c.bf16 %v246_v14, %v244_v13  ;;  %v1251_v19 = vpack.c.bf16 %v245_v18, %v243_v17  ;;  %v319_v23 = vld [vmem:[#allocation10 + $0x2] ss:$8 sm:$0x3]  ;;  %v321_v25 = vld [vmem:[#allocation10 + $0x3] ss:$8 sm:$0x3] }
 0x18d   :  { %1232 = vmatpush1.bf16.msra.mxu1 %v1231_v53  ;;  %v326_v26 = vrot.slane %v319_v23, %v1797_v22  ;;  %v330_v27 = vrot.slane %v319_v23, %v1799_v24  ;;  %v339_v28 = vrot.slane %v321_v25, %v1797_v22  ;;  %v343_v30 = vrot.slane %v321_v25, %v1799_v24 }
 0x18e   :  { %1234 = vmatprep.subr.bf16.mxu1 %v1233_v54 }
 0x191   :  { %1236 = vmatpush1.bf16.msra.mxu1 %v1235_v59 }
 0x192   :  { %1238 = vmatprep.subr.bf16.mxu1 %v1237_v60 }
 0x195   :  { %1240 = vmatpush1.bf16.msra.mxu1 %v1239_v3 }
 0x196   :  { %1242 = vmatprep.subr.bf16.mxu1 %v1241_v4 }
 0x199   :  { %1244 = vmatpush1.bf16.msra.mxu1 %v1243_v9 }
 0x19a   :  { %1246 = vmatprep.subr.bf16.mxu1 %v1245_v10 }
 0x19d   :  { %1248 = vmatpush1.bf16.msra.mxu1 %v1247_v15 }
 0x19e   :  { %1250 = vmatprep.subr.bf16.mxu1 %v1249_v16 }
 0x1a1   :  { %1252 = vmatpush1.bf16.msra.mxu1 %v1251_v19 }
 0x1a4   :  { %312 = vmatmul.mubr.f32.vlgmr.msra.gmra.mrb[0].mxu1 %v210_v33 }
 0x277   :  { %v313_v29 = vpop.f32.mrb[0].mxu1 }
 0x278   :  { %v333_v31 = vmul.f32 %v326_v26, %v313_v29  ;;  %v315_v32 = vpop.f32.mrb[1].mxu1 }
 0x279   :  { %v334_v33 = vmul.f32 %v330_v27, %v315_v32 }
 0x27a   :  { %v346_v34 = vadd.f32 %v339_v28, %v333_v31 }
 0x27b   :  { %v347_v35 = vadd.f32 %v343_v30, %v334_v33 }
 0x27c   :  { %v348_v36 = vmax.f32 %v346_v34, 0.0 }
 0x27e   :  { %v349_v37 = vadd.f32 %v348_v36, %v347_v35 }
 0x27f   :  { %1603 = dma.done.wait [#allocation9 + $0x2], 2048 }
 0x280   :  { %1604 = vsyncadd [#allocation9 + $0x2], 4294965248  ;;  %1253 = vmatprep.subr.bf16.mxu0 %v1625_v1  ;;  %1089 = vmatprep.mubr.msk.f32.mxu0 %vm1626_vm0, %v1627_v2  ;;  %v352_v38 = vld [vmem:[#allocation4] sm:$0xff]  ;;  %v353_v39 = vld [vmem:[#allocation4 + $0x8] sm:$0xff] }
 0x281   :  { %v354_v40 = vld [vmem:[#allocation4 + $0x10] sm:$0xff]  ;;  %v1254_v41 = vpack.c.bf16 %v353_v39, %v352_v38  ;;  %v355_v42 = vld [vmem:[#allocation4 + $0x18] sm:$0xff]  ;;  %v356_v44 = vld [vmem:[#allocation4 + $0x20] sm:$0xff] }
 0x282   :  { %v1257_v43 = vpack.c.bf16 %v355_v42, %v354_v40  ;;  %v357_v45 = vld [vmem:[#allocation4 + $0x28] sm:$0xff]  ;;  %v358_v47 = vld [vmem:[#allocation4 + $0x30] sm:$0xff]  ;;  %v359_v48 = vld [vmem:[#allocation4 + $0x38] sm:$0xff] }
 0x283   :  { %1255 = vmatpush3.bf16.msra.mxu0 %v1254_v41  ;;  %v1260_v46 = vpack.c.bf16 %v357_v45, %v356_v44  ;;  %v1263_v49 = vpack.c.bf16 %v359_v48, %v358_v47  ;;  %v360_v50 = vld [vmem:[#allocation4 + $0x40] sm:$0xff]  ;;  %v361_v51 = vld [vmem:[#allocation4 + $0x48] sm:$0xff]  ;;  %v362_v53 = vld [vmem:[#allocation4 + $0x50] sm:$0xff] }
 0x284   :  { %1256 = vmatprep.subr.bf16.mxu0 %v1625_v1  ;;  %v1266_v52 = vpack.c.bf16 %v361_v51, %v360_v50  ;;  %v363_v54 = vld [vmem:[#allocation4 + $0x58] sm:$0xff]  ;;  %v364_v56 = vld [vmem:[#allocation4 + $0x60] sm:$0xff]  ;;  %v365_v57 = vld [vmem:[#allocation4 + $0x68] sm:$0xff] }
 0x285   :  { %v1269_v55 = vpack.c.bf16 %v363_v54, %v362_v53  ;;  %v1272_v58 = vpack.c.bf16 %v365_v57, %v364_v56  ;;  %v366_v59 = vld [vmem:[#allocation4 + $0x70] sm:$0xff]  ;;  %v367_v60 = vld [vmem:[#allocation4 + $0x78] sm:$0xff]  ;;  %v438_v62 = vld [vmem:[#allocation10 + $0x4] ss:$0 sm:$0xff] }
 0x286   :  { %v1275_v61 = vpack.c.bf16 %v367_v60, %v366_v59  ;;  %v439_v0 = vld [vmem:[#allocation10 + $0x5] ss:$0 sm:$0xff] }
 0x287   :  { %1258 = vmatpush3.bf16.msra.mxu0 %v1257_v43 }
 0x288   :  { %1259 = vmatprep.subr.bf16.mxu0 %v1625_v1 }
 0x28b   :  { %1261 = vmatpush3.bf16.msra.mxu0 %v1260_v46 }
 0x28c   :  { %1262 = vmatprep.subr.bf16.mxu0 %v1625_v1 }
 0x28f   :  { %1264 = vmatpush3.bf16.msra.mxu0 %v1263_v49 }
 0x290   :  { %1265 = vmatprep.subr.bf16.mxu0 %v1625_v1 }
 0x293   :  { %1267 = vmatpush3.bf16.msra.mxu0 %v1266_v52 }
 0x294   :  { %1268 = vmatprep.subr.bf16.mxu0 %v1625_v1 }
 0x297   :  { %1270 = vmatpush3.bf16.msra.mxu0 %v1269_v55 }
 0x298   :  { %1271 = vmatprep.subr.bf16.mxu0 %v1625_v1 }
 0x29b   :  { %1273 = vmatpush3.bf16.msra.mxu0 %v1272_v58 }
 0x29c   :  { %1274 = vmatprep.subr.bf16.mxu0 %v1625_v1 }
 0x29f   :  { %1276 = vmatpush3.bf16.msra.mxu0 %v1275_v61 }
 0x2a2   :  { %1090 = vmatmul.mubr.f32.vlgmr.msra.gmra.mrb[2].mxu0 %v349_v37 }
 0x375   :  { %v434_v63 = vpop.f32.mrb[2].mxu0 }
 0x376   :  { %v440_v3 = vmul.f32 %v438_v62, %v434_v63  ;;  %v1091_v4 = vpop.f32.mrb[3].mxu0 }
 0x378   :  { %v441_v5 = vadd.f32 %v440_v3, %v439_v0 }
 0x37a   :  { %v442_v6 = vmax.f32 %v441_v5, 0.0 }
 0x37c   :  { %v1815_v7 = vadd.f32 %v442_v6, %v349_v37 }
 0x37d   :  { %1605 = dma.done.wait [#allocation9 + $0x3], 4096 }
 0x37e   :  { %1606 = vsyncadd [#allocation9 + $0x3], 4294963200  ;;  %542 = vmatprep.mubr.f32.mxu1 %v1627_v2  ;;  %v447_v8 = vld [vmem:[#allocation5 + $0x8] sm:$0xff]  ;;  %v449_v9 = vld [vmem:[#allocation5 + $0x18] sm:$0xff] }
 0x37f   :  { %v446_v10 = vld [vmem:[#allocation5] sm:$0xff]  ;;  %v1277_v11 = vpack.c.bf16 %v449_v9, %v447_v8  ;;  %v448_v12 = vld [vmem:[#allocation5 + $0x10] sm:$0xff]  ;;  %v451_v13 = vld [vmem:[#allocation5 + $0x28] sm:$0xff] }
 0x380   :  { %v453_v14 = vld [vmem:[#allocation5 + $0x38] sm:$0xff]  ;;  %v1279_v15 = vpack.c.bf16 %v448_v12, %v446_v10  ;;  %v450_v17 = vld [vmem:[#allocation5 + $0x20] sm:$0xff]  ;;  %v452_v18 = vld [vmem:[#allocation5 + $0x30] sm:$0xff] }
 0x381   :  { %v1281_v16 = vpack.c.bf16 %v453_v14, %v451_v13  ;;  %v455_v19 = vld [vmem:[#allocation5 + $0x48] sm:$0xff]  ;;  %1278 = vmatprep.subr.bf16.mxu1 %v1277_v11  ;;  %v457_v20 = vld [vmem:[#allocation5 + $0x58] sm:$0xff]  ;;  %v1283_v21 = vpack.c.bf16 %v452_v18, %v450_v17  ;;  %v454_v25 = vld [vmem:[#allocation5 + $0x40] sm:$0xff] }
 0x382   :  { %1280 = vmatpush1.bf16.msra.mxu1 %v1279_v15  ;;  %v1285_v23 = vpack.c.bf16 %v457_v20, %v455_v19  ;;  %v456_v26 = vld [vmem:[#allocation5 + $0x50] sm:$0xff]  ;;  %v459_v27 = vld [vmem:[#allocation5 + $0x68] sm:$0xff]  ;;  %v461_v28 = vld [vmem:[#allocation5 + $0x78] sm:$0xff] }
 0x383   :  { %1282 = vmatprep.subr.bf16.mxu1 %v1281_v16  ;;  %v1287_v29 = vpack.c.bf16 %v456_v26, %v454_v25  ;;  %v1289_v30 = vpack.c.bf16 %v461_v28, %v459_v27  ;;  %v458_v31 = vld [vmem:[#allocation5 + $0x60] sm:$0xff]  ;;  %v460_v32 = vld [vmem:[#allocation5 + $0x70] sm:$0xff]  ;;  %v463_v33 = vld [vmem:[#allocation5 + $0x88] sm:$0xff] }
 0x384   :  { %v465_v34 = vld [vmem:[#allocation5 + $0x98] sm:$0xff]  ;;  %v1291_v35 = vpack.c.bf16 %v460_v32, %v458_v31  ;;  %v462_v37 = vld [vmem:[#allocation5 + $0x80] sm:$0xff]  ;;  %v464_v38 = vld [vmem:[#allocation5 + $0x90] sm:$0xff] }
 0x385   :  { %v1293_v36 = vpack.c.bf16 %v465_v34, %v463_v33  ;;  %v467_v39 = vld [vmem:[#allocation5 + $0xa8] sm:$0xff]  ;;  %v469_v40 = vld [vmem:[#allocation5 + $0xb8] sm:$0xff]  ;;  %v1295_v41 = vpack.c.bf16 %v464_v38, %v462_v37  ;;  %v466_v43 = vld [vmem:[#allocation5 + $0xa0] sm:$0xff] }
 0x386   :  { %1284 = vmatpush1.bf16.msra.mxu1 %v1283_v21  ;;  %v1297_v42 = vpack.c.bf16 %v469_v40, %v467_v39  ;;  %v468_v44 = vld [vmem:[#allocation5 + $0xb0] sm:$0xff]  ;;  %v471_v45 = vld [vmem:[#allocation5 + $0xc8] sm:$0xff]  ;;  %v473_v46 = vld [vmem:[#allocation5 + $0xd8] sm:$0xff] }
 0x387   :  { %1286 = vmatprep.subr.bf16.mxu1 %v1285_v23  ;;  %v1299_v47 = vpack.c.bf16 %v468_v44, %v466_v43  ;;  %v1301_v48 = vpack.c.bf16 %v473_v46, %v471_v45  ;;  %v470_v49 = vld [vmem:[#allocation5 + $0xc0] sm:$0xff]  ;;  %v472_v50 = vld [vmem:[#allocation5 + $0xd0] sm:$0xff]  ;;  %v475_v51 = vld [vmem:[#allocation5 + $0xe8] sm:$0xff] }
 0x388   :  { %v477_v52 = vld [vmem:[#allocation5 + $0xf8] sm:$0xff]  ;;  %v1303_v53 = vpack.c.bf16 %v472_v50, %v470_v49  ;;  %v474_v55 = vld [vmem:[#allocation5 + $0xe0] sm:$0xff]  ;;  %v476_v56 = vld [vmem:[#allocation5 + $0xf0] sm:$0xff] }
 0x389   :  { %v1305_v54 = vpack.c.bf16 %v477_v52, %v475_v51  ;;  %v1307_v57 = vpack.c.bf16 %v476_v56, %v474_v55  ;;  %v550_v58 = vld [vmem:[#allocation10 + $0x6] ss:$8 sm:$0x3]  ;;  %v552_v59 = vld [vmem:[#allocation10 + $0x7] ss:$8 sm:$0x3] }
 0x38a   :  { %1288 = vmatpush1.bf16.msra.mxu1 %v1287_v29  ;;  %v557_v60 = vrot.slane %v550_v58, %v1797_v22  ;;  %v561_v61 = vrot.slane %v550_v58, %v1799_v24  ;;  %v570_v62 = vrot.slane %v552_v59, %v1797_v22  ;;  %v574_v0 = vrot.slane %v552_v59, %v1799_v24 }
 0x38b   :  { %1290 = vmatprep.subr.bf16.mxu1 %v1289_v30 }
 0x38e   :  { %1292 = vmatpush1.bf16.msra.mxu1 %v1291_v35 }
 0x38f   :  { %1294 = vmatprep.subr.bf16.mxu1 %v1293_v36 }
 0x392   :  { %1296 = vmatpush1.bf16.msra.mxu1 %v1295_v41 }
 0x393   :  { %1298 = vmatprep.subr.bf16.mxu1 %v1297_v42 }
 0x396   :  { %1300 = vmatpush1.bf16.msra.mxu1 %v1299_v47 }
 0x397   :  { %1302 = vmatprep.subr.bf16.mxu1 %v1301_v48 }
 0x39a   :  { %1304 = vmatpush1.bf16.msra.mxu1 %v1303_v53 }
 0x39b   :  { %1306 = vmatprep.subr.bf16.mxu1 %v1305_v54 }
 0x39e   :  { %1308 = vmatpush1.bf16.msra.mxu1 %v1307_v57 }
 0x3a1   :  { %543 = vmatmul.mubr.f32.vlgmr.msra.gmra.mrb[2].mxu1 %v1815_v7 }
 0x474   :  { %v544_v63 = vpop.f32.mrb[2].mxu1 }
 0x475   :  { %v564_v3 = vmul.f32 %v557_v60, %v544_v63  ;;  %v546_v4 = vpop.f32.mrb[3].mxu1 }
 0x476   :  { %v565_v5 = vmul.f32 %v561_v61, %v546_v4 }
 0x477   :  { %v577_v6 = vadd.f32 %v570_v62, %v564_v3 }
 0x478   :  { %v578_v8 = vadd.f32 %v574_v0, %v565_v5 }
 0x479   :  { %v579_v9 = vmax.f32 %v577_v6, 0.0 }
 0x47b   :  { %v1823_v10 = vadd.f32 %v579_v9, %v578_v8 }
 0x47c   :  { %1607 = dma.done.wait [#allocation9 + $0x4], 2048 }
 0x47d   :  { %1608 = vsyncadd [#allocation9 + $0x4], 4294965248  ;;  %1309 = vmatprep.subr.bf16.mxu0 %v1625_v1  ;;  %1124 = vmatprep.mubr.msk.f32.mxu0 %vm1626_vm0, %v1627_v2  ;;  %v583_v7 = vld [vmem:[#allocation6] sm:$0xff]  ;;  %v584_v22 = vld [vmem:[#allocation6 + $0x8] sm:$0xff] }
 0x47e   :  { %v585_v11 = vld [vmem:[#allocation6 + $0x10] sm:$0xff]  ;;  %v1310_v12 = vpack.c.bf16 %v584_v22, %v583_v7  ;;  %v586_v24 = vld [vmem:[#allocation6 + $0x18] sm:$0xff]  ;;  %v587_v14 = vld [vmem:[#allocation6 + $0x20] sm:$0xff] }
 0x47f   :  { %v1313_v13 = vpack.c.bf16 %v586_v24, %v585_v11  ;;  %v588_v15 = vld [vmem:[#allocation6 + $0x28] sm:$0xff]  ;;  %v589_v17 = vld [vmem:[#allocation6 + $0x30] sm:$0xff]  ;;  %v590_v18 = vld [vmem:[#allocation6 + $0x38] sm:$0xff] }
 0x480   :  { %1311 = vmatpush3.bf16.msra.mxu0 %v1310_v12  ;;  %v1316_v16 = vpack.c.bf16 %v588_v15, %v587_v14  ;;  %v1319_v19 = vpack.c.bf16 %v590_v18, %v589_v17  ;;  %v591_v20 = vld [vmem:[#allocation6 + $0x40] sm:$0xff]  ;;  %v592_v21 = vld [vmem:[#allocation6 + $0x48] sm:$0xff]  ;;  %v593_v25 = vld [vmem:[#allocation6 + $0x50] sm:$0xff] }
 0x481   :  { %1312 = vmatprep.subr.bf16.mxu0 %v1625_v1  ;;  %v1322_v23 = vpack.c.bf16 %v592_v21, %v591_v20  ;;  %v594_v26 = vld [vmem:[#allocation6 + $0x58] sm:$0xff]  ;;  %v595_v28 = vld [vmem:[#allocation6 + $0x60] sm:$0xff]  ;;  %v596_v29 = vld [vmem:[#allocation6 + $0x68] sm:$0xff] }
 0x482   :  { %v1325_v27 = vpack.c.bf16 %v594_v26, %v593_v25  ;;  %v1328_v30 = vpack.c.bf16 %v596_v29, %v595_v28  ;;  %v597_v31 = vld [vmem:[#allocation6 + $0x70] sm:$0xff]  ;;  %v598_v32 = vld [vmem:[#allocation6 + $0x78] sm:$0xff] }
 0x483   :  { %v1331_v33 = vpack.c.bf16 %v598_v32, %v597_v31  ;;  %v669_v34 = vld [vmem:[#allocation10 + $0x10] ss:$0 sm:$0xff]  ;;  %v670_v36 = vld [vmem:[#allocation10 + $0x11] ss:$0 sm:$0xff] }
 0x484   :  { %1314 = vmatpush3.bf16.msra.mxu0 %v1313_v13 }
 0x485   :  { %1315 = vmatprep.subr.bf16.mxu0 %v1625_v1 }
 0x488   :  { %1317 = vmatpush3.bf16.msra.mxu0 %v1316_v16 }
 0x489   :  { %1318 = vmatprep.subr.bf16.mxu0 %v1625_v1 }
 0x48c   :  { %1320 = vmatpush3.bf16.msra.mxu0 %v1319_v19 }
 0x48d   :  { %1321 = vmatprep.subr.bf16.mxu0 %v1625_v1 }
 0x490   :  { %1323 = vmatpush3.bf16.msra.mxu0 %v1322_v23 }
 0x491   :  { %1324 = vmatprep.subr.bf16.mxu0 %v1625_v1 }
 0x494   :  { %1326 = vmatpush3.bf16.msra.mxu0 %v1325_v27 }
 0x495   :  { %1327 = vmatprep.subr.bf16.mxu0 %v1625_v1 }
 0x498   :  { %1329 = vmatpush3.bf16.msra.mxu0 %v1328_v30 }
 0x499   :  { %1330 = vmatprep.subr.bf16.mxu0 %v1625_v1 }
 0x49c   :  { %1332 = vmatpush3.bf16.msra.mxu0 %v1331_v33 }
 0x49f   :  { %1125 = vmatmul.mubr.f32.vlgmr.msra.gmra.mrb[4].mxu0 %v1823_v10 }
 0x572   :  { %v665_v35 = vpop.f32.mrb[4].mxu0 }
 0x573   :  { %v671_v37 = vmul.f32 %v669_v34, %v665_v35  ;;  %v1126_v38 = vpop.f32.mrb[5].mxu0 }
 0x575   :  { %v672_v39 = vadd.f32 %v671_v37, %v670_v36 }
 0x577   :  { %v673_v40 = vmax.f32 %v672_v39, 0.0 }
 0x578   :  { %1609 = dma.done.wait [#allocation9 + $0x5], 2048 }
 0x579   :  { %1610 = vsyncadd [#allocation9 + $0x5], 4294965248  ;;  %1333 = vmatprep.subr.bf16.mxu1 %v1625_v1  ;;  %1159 = vmatprep.mubr.msk.f32.mxu1 %vm1626_vm0, %v1627_v2  ;;  %v676_v41 = vld [vmem:[#allocation7] sm:$0xff]  ;;  %v677_v42 = vld [vmem:[#allocation7 + $0x8] sm:$0xff] }
 0x57a   :  { %v678_v43 = vld [vmem:[#allocation7 + $0x10] sm:$0xff]  ;;  %v1334_v44 = vpack.c.bf16 %v677_v42, %v676_v41  ;;  %v679_v45 = vld [vmem:[#allocation7 + $0x18] sm:$0xff]  ;;  %v680_v47 = vld [vmem:[#allocation7 + $0x20] sm:$0xff] }
 0x57b   :  { %v1337_v46 = vpack.c.bf16 %v679_v45, %v678_v43  ;;  %v681_v48 = vld [vmem:[#allocation7 + $0x28] sm:$0xff]  ;;  %v682_v50 = vld [vmem:[#allocation7 + $0x30] sm:$0xff]  ;;  %v683_v51 = vld [vmem:[#allocation7 + $0x38] sm:$0xff] }
 0x57c   :  { %1335 = vmatpush3.bf16.msra.mxu1 %v1334_v44  ;;  %v1340_v49 = vpack.c.bf16 %v681_v48, %v680_v47  ;;  %v1343_v52 = vpack.c.bf16 %v683_v51, %v682_v50  ;;  %v684_v53 = vld [vmem:[#allocation7 + $0x40] sm:$0xff]  ;;  %v685_v54 = vld [vmem:[#allocation7 + $0x48] sm:$0xff]  ;;  %v686_v56 = vld [vmem:[#allocation7 + $0x50] sm:$0xff] }
 0x57d   :  { %1336 = vmatprep.subr.bf16.mxu1 %v1625_v1  ;;  %v1346_v55 = vpack.c.bf16 %v685_v54, %v684_v53  ;;  %v687_v57 = vld [vmem:[#allocation7 + $0x58] sm:$0xff]  ;;  %v688_v59 = vld [vmem:[#allocation7 + $0x60] sm:$0xff]  ;;  %v689_v60 = vld [vmem:[#allocation7 + $0x68] sm:$0xff] }
 0x57e   :  { %v1349_v58 = vpack.c.bf16 %v687_v57, %v686_v56  ;;  %v1352_v61 = vpack.c.bf16 %v689_v60, %v688_v59  ;;  %v690_v62 = vld [vmem:[#allocation7 + $0x70] sm:$0xff]  ;;  %v691_v63 = vld [vmem:[#allocation7 + $0x78] sm:$0xff] }
 0x57f   :  { %v1355_v0 = vpack.c.bf16 %v691_v63, %v690_v62  ;;  %v762_v3 = vld [vmem:[#allocation10 + $0x12] ss:$0 sm:$0xff]  ;;  %v763_v5 = vld [vmem:[#allocation10 + $0x13] ss:$0 sm:$0xff] }
 0x580   :  { %1338 = vmatpush3.bf16.msra.mxu1 %v1337_v46 }
 0x581   :  { %1339 = vmatprep.subr.bf16.mxu1 %v1625_v1 }
 0x584   :  { %1341 = vmatpush3.bf16.msra.mxu1 %v1340_v49 }
 0x585   :  { %1342 = vmatprep.subr.bf16.mxu1 %v1625_v1 }
 0x588   :  { %1344 = vmatpush3.bf16.msra.mxu1 %v1343_v52 }
 0x589   :  { %1345 = vmatprep.subr.bf16.mxu1 %v1625_v1 }
 0x58c   :  { %1347 = vmatpush3.bf16.msra.mxu1 %v1346_v55 }
 0x58d   :  { %1348 = vmatprep.subr.bf16.mxu1 %v1625_v1 }
 0x590   :  { %1350 = vmatpush3.bf16.msra.mxu1 %v1349_v58 }
 0x591   :  { %1351 = vmatprep.subr.bf16.mxu1 %v1625_v1 }
 0x594   :  { %1353 = vmatpush3.bf16.msra.mxu1 %v1352_v61 }
 0x595   :  { %1354 = vmatprep.subr.bf16.mxu1 %v1625_v1 }
 0x598   :  { %1356 = vmatpush3.bf16.msra.mxu1 %v1355_v0 }
 0x59b   :  { %1160 = vmatmul.mubr.f32.vlgmr.msra.gmra.mrb[4].mxu1 %v673_v40 }
 0x66e   :  { %v758_v4 = vpop.f32.mrb[4].mxu1 }
 0x66f   :  { %v764_v6 = vmul.f32 %v762_v3, %v758_v4  ;;  %v1161_v8 = vpop.f32.mrb[5].mxu1 }
 0x671   :  { %v765_v9 = vadd.f32 %v764_v6, %v763_v5 }
 0x673   :  { %v929_v7 = vmul.f32 -1.442695, %v765_v9 }
 0x675   :  { %1395 = vpow2.f32 %v929_v7 }
 0x67f   :  { %v1396_v22 = vpop.eup %1395 }
 0x680   :  { %v769_v11 = vadd.f32 1.0, %v1396_v22 }
 0x682   :  { %1397 = vrcp.f32 %v769_v11 }
 0x68c   :  { %v1398_v12 = vpop.eup %1397 }
 0x68d   :  { %v772_v24 = vmul.f32 %v1398_v12, %v1823_v10 }
 0x68e   :  { %1611 = dma.done.wait [#allocation9 + $0x6], 2048 }
 0x68f   :  { %1612 = vsyncadd [#allocation9 + $0x6], 4294965248  ;;  %1357 = vmatprep.subr.bf16.mxu0 %v1625_v1  ;;  %1194 = vmatprep.mubr.msk.f32.mxu0 %vm1626_vm0, %v1627_v2  ;;  %v775_v13 = vld [vmem:[#allocation8] sm:$0xff]  ;;  %v776_v14 = vld [vmem:[#allocation8 + $0x8] sm:$0xff]  ;;  %s1628_s8 = smov [#allocation13]  }
 0x690   :  { %v777_v15 = vld [vmem:[#allocation8 + $0x10] sm:$0xff]  ;;  %v1358_v16 = vpack.c.bf16 %v776_v14, %v775_v13  ;;  %v778_v17 = vld [vmem:[#allocation8 + $0x18] sm:$0xff]  ;;  %v779_v19 = vld [vmem:[#allocation8 + $0x20] sm:$0xff]  ;;  %s872_s13 = sshll.u32 %s1628_s8, 4  ;;  %s873_s13 = int_to_ptr.vmem [resolvable:$true] %s872_s13 }
 0x691   :  { %v1361_v18 = vpack.c.bf16 %v778_v17, %v777_v15  ;;  %v780_v20 = vld [vmem:[#allocation8 + $0x28] sm:$0xff]  ;;  %v781_v21 = vld [vmem:[#allocation8 + $0x30] sm:$0xff]  ;;  %v782_v23 = vld [vmem:[#allocation8 + $0x38] sm:$0xff]  ;;  %s1575_s1 = scalar_lea.vmem %s873_s13, 128  ;;  %p1580_p9 = scmp.lt.s32.totalorder %s873_s13, %s873_s13 }
 0x692   :  { %1359 = vmatpush3.bf16.msra.mxu0 %v1358_v16  ;;  %v1364_v10 = vpack.c.bf16 %v780_v20, %v779_v19  ;;  %v1367_v25 = vpack.c.bf16 %v782_v23, %v781_v21  ;;  %v783_v2 = vld [vmem:[#allocation8 + $0x40] sm:$0xff]  ;;  %v784_v26 = vld [vmem:[#allocation8 + $0x48] sm:$0xff]  ;;  %v785_v28 = vld [vmem:[#allocation8 + $0x50] sm:$0xff]  ;;  %p1576_p8 = scmp.ne.s32.totalorder %s873_s13, %s1575_s1  ;;  %p1581_p10 = scmp.lt.s32.totalorder %s1575_s1, %s1575_s1 }
 0x693   :  { %1360 = vmatprep.subr.bf16.mxu0 %v1625_v1  ;;  %v1370_v27 = vpack.c.bf16 %v784_v26, %v783_v2  ;;  %v786_v29 = vld [vmem:[#allocation8 + $0x58] sm:$0xff]  ;;  %v787_v31 = vld [vmem:[#allocation8 + $0x60] sm:$0xff]  ;;  %v788_v32 = vld [vmem:[#allocation8 + $0x68] sm:$0xff] }
 0x694   :  { %v1373_v30 = vpack.c.bf16 %v786_v29, %v785_v28  ;;  %v1376_v33 = vpack.c.bf16 %v788_v32, %v787_v31  ;;  %v789_v34 = vld [vmem:[#allocation8 + $0x70] sm:$0xff]  ;;  %v790_v35 = vld [vmem:[#allocation8 + $0x78] sm:$0xff]  ;;  %p1582_p11 = por %p1581_p10, %p1580_p9 }
 0x695   :  { %v1379_v36 = vpack.c.bf16 %v790_v35, %v789_v34  ;;  %v861_v37 = vld [vmem:[#allocation10 + $0x14] ss:$0 sm:$0xff]  ;;  %v862_v39 = vld [vmem:[#allocation10 + $0x15] ss:$0 sm:$0xff] }
 0x696   :  { %1362 = vmatpush3.bf16.msra.mxu0 %v1361_v18  ;;  %p1583_p12 = pnand %p1582_p11, %p1576_p8 }
 0x697   :  { %1363 = vmatprep.subr.bf16.mxu0 %v1625_v1 }
 0x69a   :  { %1365 = vmatpush3.bf16.msra.mxu0 %v1364_v10 }
 0x69b   :  { %1366 = vmatprep.subr.bf16.mxu0 %v1625_v1 }
 0x69e   :  { %1368 = vmatpush3.bf16.msra.mxu0 %v1367_v25 }
 0x69f   :  { %1369 = vmatprep.subr.bf16.mxu0 %v1625_v1 }
 0x6a2   :  { %1371 = vmatpush3.bf16.msra.mxu0 %v1370_v27 }
 0x6a3   :  { %1372 = vmatprep.subr.bf16.mxu0 %v1625_v1 }
 0x6a6   :  { %1374 = vmatpush3.bf16.msra.mxu0 %v1373_v30 }
 0x6a7   :  { %1375 = vmatprep.subr.bf16.mxu0 %v1625_v1 }
 0x6aa   :  { %1377 = vmatpush3.bf16.msra.mxu0 %v1376_v33 }
 0x6ab   :  { %1378 = vmatprep.subr.bf16.mxu0 %v1625_v1 }
 0x6ae   :  { %1380 = vmatpush3.bf16.msra.mxu0 %v1379_v36 }
 0x6b1   :  { %1195 = vmatmul.mubr.f32.vlgmr.msra.gmra.mrb[6].mxu0 %v772_v24 }
 0x784   :  { %v857_v38 = vpop.f32.mrb[6].mxu0 }
 0x785   :  { %v863_v40 = vmul.f32 %v861_v37, %v857_v38  ;;  %v1196_v41 = vpop.f32.mrb[7].mxu0 }
 0x787   :  { %v864_v42 = vadd.f32 %v863_v40, %v862_v39 }
 0x789   :  { %865 = vst [vmem:[#allocation13] sm:$0xff] %v864_v42 }
 0x78a   :  { %1586 = shalt.err (!%p1583_p12)
}
 0x78b   :  { %s1587_s5 = scalar_lea.hbm %s1878_s9, 128 }
 0x78c   :  { %p1588_p13 = scmp.ne.s32.totalorder %s1878_s9, %s1587_s5  ;;  %p1591_p0 = scmp.lt.u32.totalorder %s1587_s5, %s1878_s9 }
 0x78e   :  { %p1593_p1 = pnand %p1591_p0, %p1588_p13 }
 0x790   :  { %1596 = shalt.err (!%p1593_p1)
}
 0x791   :  { %875 = dma.vmem_to_hbm [thread:$0]  %s873_s13, 128, %s1878_s9, [#allocation12]  }
 0x792   :  { %1613 = dma.done.wait [#allocation12], 128  }
 0x793   :  { %1614 = vsyncadd [#allocation12], 4294967168 }
 0x794   :  { %879 = vsyncpa [#allocation11], 1 }
 0x795   :  { %880 = vsyncpa [#allocation12], 1 }
 0x796   :  { %881 = vsyncmov [#allocation9] }
 0x799   :  { %s882_s17 = vpop.sfrf %881 }
 0x79a   :  { %p930_p2 = scmp.ne.s32.totalorder %s882_s17, 0 }
 0x79c   :  { %886 = shalt.err (%p930_p2)  }
 0x79d   :  { %888 = vsyncmov [#allocation9 + $0x1] }
 0x7a0   :  { %s889_s18 = vpop.sfrf %888 }
 0x7a1   :  { %p931_p3 = scmp.ne.s32.totalorder %s889_s18, 0 }
 0x7a3   :  { %893 = shalt.err (%p931_p3)  }
 0x7a4   :  { %895 = vsyncmov [#allocation9 + $0x2] }
 0x7a7   :  { %s896_s19 = vpop.sfrf %895 }
 0x7a8   :  { %p932_p4 = scmp.ne.s32.totalorder %s896_s19, 0 }
 0x7aa   :  { %900 = shalt.err (%p932_p4)  }
 0x7ab   :  { %902 = vsyncmov [#allocation9 + $0x3] }
 0x7ae   :  { %s903_s20 = vpop.sfrf %902 }
 0x7af   :  { %p933_p5 = scmp.ne.s32.totalorder %s903_s20, 0 }
 0x7b1   :  { %907 = shalt.err (%p933_p5)  }
 0x7b2   :  { %909 = vsyncmov [#allocation9 + $0x4] }
 0x7b5   :  { %s910_s9 = vpop.sfrf %909 }
 0x7b6   :  { %p934_p6 = scmp.ne.s32.totalorder %s910_s9, 0 }
 0x7b8   :  { %914 = shalt.err (%p934_p6)  }
 0x7b9   :  { %916 = vsyncmov [#allocation9 + $0x5] }
 0x7bc   :  { %s917_s6 = vpop.sfrf %916 }
 0x7bd   :  { %p935_p7 = scmp.ne.s32.totalorder %s917_s6, 0 }
 0x7bf   :  { %921 = shalt.err (%p935_p7)  }
 0x7c0   :  { %923 = vsyncmov [#allocation9 + $0x6] }
 0x7c3   :  { %s924_s21 = vpop.sfrf %923 }
 0x7c4   :  { %p936_p8 = scmp.ne.s32.totalorder %s924_s21, 0 }
 0x7c6   :  { %928 = shalt.err (%p936_p8)  }

</bundles_post_ra>
